<compile_context>
chip_gen: v7x
topology: tpu7x:2x2x1
jax: 0.10.0
libtpu: 0.0.40
codegen_flags: <defaults>
</compile_context>

<pallas_src>
import functools

import jax
import jax.numpy as jnp
from jax import lax
from jax.experimental import pallas as pl
from jax.experimental.pallas import tpu as pltpu


def _layernorm(z, gamma, beta, eps=1e-5):
    mu = jnp.mean(z, axis=-1, keepdims=True)
    c = z - mu
    var = jnp.mean(c * c, axis=-1, keepdims=True)
    return c * lax.rsqrt(var + eps) * gamma + beta


def encoder_block_kernel(xq_ref, xkv_ref, bias_ref,
                         wq_ref, bq_ref, wk_ref, bk_ref, wv_ref, bv_ref,
                         wp_ref, bp_ref,
                         w1_ref, b1_ref, w2_ref, b2_ref,
                         g2_ref, beta2_ref,
                         out_ref,
                         k_scr, v_scr, attn_scr,
                         *, n_heads):
    f32 = jnp.float32
    bf16 = jnp.bfloat16

    xq = xq_ref[0]                      # (TQ, D) f32 — query rows / residual
    tq, D = xq.shape
    dh = D // n_heads

    # --- K/V projections: once per batch element, cached in bf16 VMEM scratch ---
    @pl.when(pl.program_id(1) == 0)
    def _():
        xkv = xkv_ref[0]                # (S, D) bf16 — full sequence
        k_scr[...] = (jnp.dot(xkv, wk_ref[...], preferred_element_type=f32)
                      + bk_ref[...]).astype(bf16)
        v_scr[...] = (jnp.dot(xkv, wv_ref[...], preferred_element_type=f32)
                      + bv_ref[...]).astype(bf16)

    # Additive mask bias precomputed in the wrapper (0 / -1e30), shipped as bf16.
    bias = bias_ref[0].astype(f32)      # (TQ, S)

    # Q projection; 1/sqrt(dh) already folded into Wq/bq. Cast to bf16 once.
    q = (jnp.dot(xq.astype(bf16), wq_ref[...], preferred_element_type=f32)
         + bq_ref[...]).astype(bf16)    # (TQ, D)

    contract_last = (((1,), (1,)), ((), ()))   # contract last dims of Q and K (no K^T)

    # Per-head attention; head outputs are assembled into a (TQ, D) bf16 buffer.
    for h in range(n_heads):            # static, fully unrolled head loop
        sl = slice(h * dh, (h + 1) * dh)
        s = lax.dot_general(q[:, sl], k_scr[:, sl], contract_last,
                            preferred_element_type=f32) + bias          # (TQ, S)
        m = jnp.max(s, axis=-1, keepdims=True)
        e = jnp.exp(s - m)
        denom = jnp.sum(e, axis=-1, keepdims=True)
        probs = e * pl.reciprocal(denom, approx=True)                   # EUP divide
        head = jnp.dot(probs.astype(bf16), v_scr[:, sl],
                       preferred_element_type=f32)                      # (TQ, dh)
        attn_scr[:, sl] = head.astype(bf16)

    # Single full-K output projection: (TQ, D) @ (D, D).
    proj = jnp.dot(attn_scr[...], wp_ref[...], preferred_element_type=f32) + bp_ref[...]

    g2 = g2_ref[...]
    b2 = beta2_ref[...]

    # out1 = x + ln2(attention_output)
    out1 = xq + _layernorm(proj, g2, b2)

    # feed-forward block: W2(relu(W1(out1)))
    h1 = jnp.maximum(
        jnp.dot(out1.astype(bf16), w1_ref[...], preferred_element_type=f32) + b1_ref[...],
        0.0)
    ff = jnp.dot(h1.astype(bf16), w2_ref[...], preferred_element_type=f32) + b2_ref[...]

    # out = out1 + ln2(ffn_output)   (reference module reuses ln2; ln1 is unused)
    out_ref[0] = out1 + _layernorm(ff, g2, b2)


def encoder_block(x, mask, params, n_heads, *, q_block=None):
    B, S, D = x.shape
    d_ff = params["w1"].shape[0]
    dh = D // n_heads

    f32 = jnp.float32
    bf16 = jnp.bfloat16

    # Generation-aware VMEM budget (cap minus headroom; ~48 MiB on v7x, ~112 MiB on v5e/v6e).
    try:
        vmem_cap = int(pltpu.get_tpu_info().vmem_capacity_bytes)
    except Exception:
        vmem_cap = 64 * 1024 * 1024
    vmem_limit = int(max(32 * 1024 * 1024,
                         min(vmem_cap - 16 * 1024 * 1024, 112 * 1024 * 1024)))

    if q_block is None:
        q_block = min(S, 512 if vmem_cap >= 96 * 1024 * 1024 else 256)
    assert S % q_block == 0, "S must be divisible by q_block"
    nq = S // q_block

    # Pre-transpose nn.Linear weights (out,in) -> (in,out), cast to bf16 for the MXU,
    # and fold the attention scale into Wq / bq.
    scale = float(dh) ** -0.5
    wq_t = (params["wq"] * scale).T.astype(bf16)
    bq_s = (params["bq"] * scale).astype(f32)
    wk_t = params["wk"].T.astype(bf16)
    wv_t = params["wv"].T.astype(bf16)
    wp_t = params["wp"].T.astype(bf16)
    w1_t = params["w1"].T.astype(bf16)          # (D, d_ff)
    w2_t = params["w2"].T.astype(bf16)          # (d_ff, D)

    x_bf = x.astype(bf16)                       # bf16 copy of x for K/V (halves that DMA)
    # Additive mask bias, matching the reference's `mask == 0 -> -inf` (finite -1e30).
    mask_bias = jnp.where(mask == 0, f32(-1e30), f32(0.0)).astype(bf16)

    full = lambda shape: pl.BlockSpec(shape, lambda b, qi: (0, 0))

    in_specs = [
        pl.BlockSpec((1, q_block, D), lambda b, qi: (b, qi, 0)),   # x (Q rows / residual, f32)
        pl.BlockSpec((1, S, D), lambda b, qi: (b, 0, 0)),          # x (full seq for K/V, bf16)
        pl.BlockSpec((1, q_block, S), lambda b, qi: (b, qi, 0)),   # additive mask bias (bf16)
        full((D, D)), full((1, D)),        # Wq^T (scaled), bq (scaled)
        full((D, D)), full((1, D)),        # Wk^T, bk
        full((D, D)), full((1, D)),        # Wv^T, bv
        full((D, D)), full((1, D)),        # Wp^T, bp
        full((D, d_ff)), full((1, d_ff)),  # W1^T, b1
        full((d_ff, D)), full((1, D)),     # W2^T, b2
        full((1, D)), full((1, D)),        # ln2 gamma, beta
    ]

    kernel = functools.partial(encoder_block_kernel, n_heads=n_heads)

    return pl.pallas_call(
        kernel,
        out_shape=jax.ShapeDtypeStruct((B, S, D), f32),
        grid=(B, nq),
        in_specs=in_specs,
        out_specs=pl.BlockSpec((1, q_block, D), lambda b, qi: (b, qi, 0)),
        scratch_shapes=[
            pltpu.VMEM((S, D), bf16),          # K cache (per batch element)
            pltpu.VMEM((S, D), bf16),          # V cache (per batch element)
            pltpu.VMEM((q_block, D), bf16),    # assembled head outputs
        ],
        compiler_params=pltpu.CompilerParams(
            # b is "parallel" (megacore/v7x); qi is "arbitrary" because the K/V
            # scratch computed at qi == 0 is reused across q-blocks.
            dimension_semantics=("parallel", "arbitrary"),
            vmem_limit_bytes=vmem_limit),
    )(x, x_bf, mask_bias,
      wq_t, bq_s, wk_t, params["bk"].astype(f32),
      wv_t, params["bv"].astype(f32), wp_t, params["bp"].astype(f32),
      w1_t, params["b1"].astype(f32), w2_t, params["b2"].astype(f32),
      params["g2"].astype(f32), params["beta2"].astype(f32))


# ------------- pure-JAX reference (PyTorch module in eval mode, bf16 MXU inputs) -----------
def encoder_block_ref(x, mask, params, n_heads):
    D = x.shape[-1]
    dh = D // n_heads
    bf16 = jnp.bfloat16

    def lin(z, w, b):   # nn.Linear: z @ W^T + b  (bf16 operands, f32 accumulation)
        return jnp.dot(z.astype(bf16), w.T.astype(bf16),
                       preferred_element_type=jnp.float32) + b[0]

    q = lin(x, params["wq"], params["bq"])
    k = lin(x, params["wk"], params["bk"])
    v = lin(x, params["wv"], params["bv"])

    outs = []
    for h in range(n_heads):
        qh = q[..., h * dh:(h + 1) * dh]
        kh = k[..., h * dh:(h + 1) * dh]
        vh = v[..., h * dh:(h + 1) * dh]
        s = jnp.einsum("bqd,bkd->bqk", qh.astype(bf16), kh.astype(bf16),
                       preferred_element_type=jnp.float32) * dh ** (-0.5)
        s = jnp.where(mask == 0, -jnp.inf, s)
        w = jax.nn.softmax(s, axis=-1)
        outs.append(jnp.einsum("bqk,bkd->bqd", w.astype(bf16), vh.astype(bf16),
                               preferred_element_type=jnp.float32))
    attn = jnp.concatenate(outs, axis=-1)
    proj = lin(attn, params["wp"], params["bp"])

    def ln(z):
        mu = jnp.mean(z, axis=-1, keepdims=True)
        var = jnp.mean((z - mu) ** 2, axis=-1, keepdims=True)
        return (z - mu) * lax.rsqrt(var + 1e-5) * params["g2"][0] + params["beta2"][0]

    out1 = x + ln(proj)
    h1 = jax.nn.relu(lin(out1, params["w1"], params["b1"]))
    ff = lin(h1, params["w2"], params["b2"])
    return out1 + ln(ff)


if __name__ == "__main__":
    B, S, D, H, DFF = 2, 8, 128, 4, 256   # D, DFF lane-aligned (128); dh = 32

    key = jax.random.PRNGKey(0)
    keys = jax.random.split(key, 14)

    def w(k, shape, scale=0.05):
        return (scale * jax.random.normal(k, shape)).astype(jnp.float32)

    params = {
        "wq": w(keys[0], (D, D)), "bq": w(keys[1], (1, D)),
        "wk": w(keys[2], (D, D)), "bk": w(keys[3], (1, D)),
        "wv": w(keys[4], (D, D)), "bv": w(keys[5], (1, D)),
        "wp": w(keys[6], (D, D)), "bp": w(keys[7], (1, D)),
        "w1": w(keys[8], (DFF, D)), "b1": w(keys[9], (1, DFF)),
        "w2": w(keys[10], (D, DFF)), "b2": w(keys[11], (1, D)),
        "g2": (1.0 + 0.1 * jax.random.normal(keys[12], (1, D))).astype(jnp.float32),
        "beta2": (0.05 * jax.random.normal(keys[13], (1, D))).astype(jnp.float32),
    }

    x = jax.random.normal(jax.random.fold_in(key, 100), (B, S, D)).astype(jnp.float32)
    # causal mask (every row has at least one unmasked position)
    mask = jnp.tril(jnp.ones((S, S), jnp.float32))[None].repeat(B, axis=0)

    out = jax.block_until_ready(encoder_block(x, mask, params, n_heads=H))
    ref = encoder_block_ref(x, mask, params, n_heads=H)

    assert out.shape == (B, S, D)
    # Both kernel and reference feed the MXU bf16 operands (f32 accumulation); the tolerance
    # additionally covers the bf16 rounding of the folded 1/sqrt(dh) scale and the
    # approx (EUP) reciprocal in the kernel's softmax.
    assert jnp.allclose(out, ref, atol=2e-2, rtol=2e-2), "mismatch vs JAX reference"

    print("KERNEL_OK")
</pallas_src>

<mosaic_0001>
module attributes {stable_mosaic.version = 11 : i64} {
  func.func @encoder_block_kernel(%arg0: i32, %arg1: i32, %arg2: memref<1x8x128xf32, #tpu.memory_space<vmem>>, %arg3: memref<1x8x128xbf16, #tpu.memory_space<vmem>>, %arg4: memref<1x8x8xbf16, #tpu.memory_space<vmem>>, %arg5: memref<128x128xbf16, #tpu.memory_space<vmem>>, %arg6: memref<1x128xf32, #tpu.memory_space<vmem>>, %arg7: memref<128x128xbf16, #tpu.memory_space<vmem>>, %arg8: memref<1x128xf32, #tpu.memory_space<vmem>>, %arg9: memref<128x128xbf16, #tpu.memory_space<vmem>>, %arg10: memref<1x128xf32, #tpu.memory_space<vmem>>, %arg11: memref<128x128xbf16, #tpu.memory_space<vmem>>, %arg12: memref<1x128xf32, #tpu.memory_space<vmem>>, %arg13: memref<128x256xbf16, #tpu.memory_space<vmem>>, %arg14: memref<1x256xf32, #tpu.memory_space<vmem>>, %arg15: memref<256x128xbf16, #tpu.memory_space<vmem>>, %arg16: memref<1x128xf32, #tpu.memory_space<vmem>>, %arg17: memref<1x128xf32, #tpu.memory_space<vmem>>, %arg18: memref<1x128xf32, #tpu.memory_space<vmem>>, %arg19: memref<1x8x128xf32, #tpu.memory_space<vmem>>, %arg20: memref<8x128xbf16, #tpu.memory_space<vmem>>, %arg21: memref<8x128xbf16, #tpu.memory_space<vmem>>, %arg22: memref<8x128xbf16, #tpu.memory_space<vmem>>) attributes {dimension_semantics = [#tpu.dimension_semantics<parallel>, #tpu.dimension_semantics<arbitrary>], iteration_bounds = array<i64: 2, 1>, scalar_prefetch = 0 : i64, scratch_operands = 3 : i64, tpu.core_type = #tpu.core_type<tc>, window_params = [{transform_indices = @transform_0, window_bounds = array<i64: 1, 8, 128>}, {transform_indices = @transform_1, window_bounds = array<i64: 1, 8, 128>}, {transform_indices = @transform_2, window_bounds = array<i64: 1, 8, 8>}, {pipeline_mode = #tpu.pipeline_mode<synchronous>, transform_indices = @transform_3, window_bounds = array<i64: 128, 128>}, {pipeline_mode = #tpu.pipeline_mode<synchronous>, transform_indices = @transform_4, window_bounds = array<i64: 1, 128>}, {pipeline_mode = #tpu.pipeline_mode<synchronous>, transform_indices = @transform_5, window_bounds = array<i64: 128, 128>}, {pipeline_mode = #tpu.pipeline_mode<synchronous>, transform_indices = @transform_6, window_bounds = array<i64: 1, 128>}, {pipeline_mode = #tpu.pipeline_mode<synchronous>, transform_indices = @transform_7, window_bounds = array<i64: 128, 128>}, {pipeline_mode = #tpu.pipeline_mode<synchronous>, transform_indices = @transform_8, window_bounds = array<i64: 1, 128>}, {pipeline_mode = #tpu.pipeline_mode<synchronous>, transform_indices = @transform_9, window_bounds = array<i64: 128, 128>}, {pipeline_mode = #tpu.pipeline_mode<synchronous>, transform_indices = @transform_10, window_bounds = array<i64: 1, 128>}, {pipeline_mode = #tpu.pipeline_mode<synchronous>, transform_indices = @transform_11, window_bounds = array<i64: 128, 256>}, {pipeline_mode = #tpu.pipeline_mode<synchronous>, transform_indices = @transform_12, window_bounds = array<i64: 1, 256>}, {pipeline_mode = #tpu.pipeline_mode<synchronous>, transform_indices = @transform_13, window_bounds = array<i64: 256, 128>}, {pipeline_mode = #tpu.pipeline_mode<synchronous>, transform_indices = @transform_14, window_bounds = array<i64: 1, 128>}, {pipeline_mode = #tpu.pipeline_mode<synchronous>, transform_indices = @transform_15, window_bounds = array<i64: 1, 128>}, {pipeline_mode = #tpu.pipeline_mode<synchronous>, transform_indices = @transform_16, window_bounds = array<i64: 1, 128>}, {transform_indices = @transform_17, window_bounds = array<i64: 1, 8, 128>}]} {
    %c0 = arith.constant 0 : index
    %c0_0 = arith.constant 0 : index
    %c0_1 = arith.constant 0 : index
    %0 = vector.load %arg2[%c0, %c0_0, %c0_1] : memref<1x8x128xf32, #tpu.memory_space<vmem>>, vector<1x8x128xf32>
    %1 = vector.shape_cast %0 : vector<1x8x128xf32> to vector<8x128xf32>
    %c0_i32 = arith.constant 0 : i32
    %2 = arith.cmpi eq, %arg1, %c0_i32 : i32
    %3 = arith.extui %2 : i1 to i32
    %c0_i32_2 = arith.constant 0 : i32
    %4 = arith.cmpi ne, %3, %c0_i32_2 : i32
    scf.if %4 {
      %c0_82 = arith.constant 0 : index
      %c0_83 = arith.constant 0 : index
      %c0_84 = arith.constant 0 : index
      %158 = vector.load %arg3[%c0_82, %c0_83, %c0_84] : memref<1x8x128xbf16, #tpu.memory_space<vmem>>, vector<1x8x128xbf16>
      %159 = vector.shape_cast %158 : vector<1x8x128xbf16> to vector<8x128xbf16>
      %c0_85 = arith.constant 0 : index
      %c0_86 = arith.constant 0 : index
      %160 = vector.load %arg7[%c0_85, %c0_86] : memref<128x128xbf16, #tpu.memory_space<vmem>>, vector<128x128xbf16>
      %cst_87 = arith.constant dense<0.000000e+00> : vector<8x128xf32>
      %161 = tpu.matmul %159, %160, %cst_87 {dimension_numbers = #tpu.dot_dimension_numbers<[1], [0], [0], [1], [0, 0, 1, 1], [], []>} : vector<8x128xbf16>, vector<128x128xbf16>, vector<8x128xf32> -> vector<8x128xf32>
      %c0_88 = arith.constant 0 : index
      %c0_89 = arith.constant 0 : index
      %162 = vector.load %arg8[%c0_88, %c0_89] : memref<1x128xf32, #tpu.memory_space<vmem>>, vector<1x128xf32>
      %163 = vector.broadcast %162 : vector<1x128xf32> to vector<8x128xf32>
      %164 = arith.addf %161, %163 : vector<8x128xf32>
      %165 = arith.truncf %164 : vector<8x128xf32> to vector<8x128xbf16>
      %c0_90 = arith.constant 0 : index
      %c0_91 = arith.constant 0 : index
      %166 = vector.load %arg20[%c0_90, %c0_91] : memref<8x128xbf16, #tpu.memory_space<vmem>>, vector<8x128xbf16>
      tpu.vector_store %arg20[%c0_90, %c0_91], %165 {strides = array<i32>} : memref<8x128xbf16, #tpu.memory_space<vmem>>, vector<8x128xbf16>,
      %c0_92 = arith.constant 0 : index
      %c0_93 = arith.constant 0 : index
      %167 = vector.load %arg9[%c0_92, %c0_93] : memref<128x128xbf16, #tpu.memory_space<vmem>>, vector<128x128xbf16>
      %cst_94 = arith.constant dense<0.000000e+00> : vector<8x128xf32>
      %168 = tpu.matmul %159, %167, %cst_94 {dimension_numbers = #tpu.dot_dimension_numbers<[1], [0], [0], [1], [0, 0, 1, 1], [], []>} : vector<8x128xbf16>, vector<128x128xbf16>, vector<8x128xf32> -> vector<8x128xf32>
      %c0_95 = arith.constant 0 : index
      %c0_96 = arith.constant 0 : index
      %169 = vector.load %arg10[%c0_95, %c0_96] : memref<1x128xf32, #tpu.memory_space<vmem>>, vector<1x128xf32>
      %170 = vector.broadcast %169 : vector<1x128xf32> to vector<8x128xf32>
      %171 = arith.addf %168, %170 : vector<8x128xf32>
      %172 = arith.truncf %171 : vector<8x128xf32> to vector<8x128xbf16>
      %c0_97 = arith.constant 0 : index
      %c0_98 = arith.constant 0 : index
      %173 = vector.load %arg21[%c0_97, %c0_98] : memref<8x128xbf16, #tpu.memory_space<vmem>>, vector<8x128xbf16>
      tpu.vector_store %arg21[%c0_97, %c0_98], %172 {strides = array<i32>} : memref<8x128xbf16, #tpu.memory_space<vmem>>, vector<8x128xbf16>,
    } else {
    }
    %c0_3 = arith.constant 0 : index
    %c0_4 = arith.constant 0 : index
    %c0_5 = arith.constant 0 : index
    %5 = vector.load %arg4[%c0_3, %c0_4, %c0_5] : memref<1x8x8xbf16, #tpu.memory_space<vmem>>, vector<1x8x8xbf16>
    %6 = vector.shape_cast %5 : vector<1x8x8xbf16> to vector<8x8xbf16>
    %7 = arith.extf %6 : vector<8x8xbf16> to vector<8x8xf32>
    %8 = arith.truncf %1 : vector<8x128xf32> to vector<8x128xbf16>
    %c0_6 = arith.constant 0 : index
    %c0_7 = arith.constant 0 : index
    %9 = vector.load %arg5[%c0_6, %c0_7] : memref<128x128xbf16, #tpu.memory_space<vmem>>, vector<128x128xbf16>
    %cst = arith.constant dense<0.000000e+00> : vector<8x128xf32>
    %10 = tpu.matmul %8, %9, %cst {dimension_numbers = #tpu.dot_dimension_numbers<[1], [0], [0], [1], [0, 0, 1, 1], [], []>} : vector<8x128xbf16>, vector<128x128xbf16>, vector<8x128xf32> -> vector<8x128xf32>
    %c0_8 = arith.constant 0 : index
    %c0_9 = arith.constant 0 : index
    %11 = vector.load %arg6[%c0_8, %c0_9] : memref<1x128xf32, #tpu.memory_space<vmem>>, vector<1x128xf32>
    %12 = vector.broadcast %11 : vector<1x128xf32> to vector<8x128xf32>
    %13 = arith.addf %10, %12 : vector<8x128xf32>
    %14 = arith.truncf %13 : vector<8x128xf32> to vector<8x128xbf16>
    %15 = vector.extract_strided_slice %14 {offsets = [0, 0], sizes = [8, 32], strides = [1, 1]} : vector<8x128xbf16> to vector<8x32xbf16>
    %c0_10 = arith.constant 0 : index
    %c0_11 = arith.constant 0 : index
    %16 = vector.load %arg20[%c0_10, %c0_11] : memref<8x128xbf16, #tpu.memory_space<vmem>>, vector<8x32xbf16>
    %cst_12 = arith.constant dense<0.000000e+00> : vector<8x8xf32>
    %17 = tpu.matmul %15, %16, %cst_12 {dimension_numbers = #tpu.dot_dimension_numbers<[1], [1], [0], [0], [0, 0, 1, 0], [], []>} : vector<8x32xbf16>, vector<8x32xbf16>, vector<8x8xf32> -> vector<8x8xf32>
    %18 = arith.addf %17, %7 : vector<8x8xf32>
    %cst_13 = arith.constant dense<0xFF800000> : vector<8xf32>
    %19 = vector.multi_reduction <maximumf>, %18, %cst_13 [1] : vector<8x8xf32> to vector<8xf32>
    %20 = vector.shape_cast %19 : vector<8xf32> to vector<8x1xf32>
    %21 = vector.broadcast %20 : vector<8x1xf32> to vector<8x8xf32>
    %22 = arith.subf %18, %21 : vector<8x8xf32>
    %23 = math.exp %22 : vector<8x8xf32>
    %cst_14 = arith.constant dense<0.000000e+00> : vector<8xf32>
    %24 = vector.multi_reduction <add>, %23, %cst_14 [1] : vector<8x8xf32> to vector<8xf32>
    %25 = vector.shape_cast %24 : vector<8xf32> to vector<8x1xf32>
    %26 = tpu.reciprocal %25 {approx = true} : vector<8x1xf32> -> vector<8x1xf32>
    %27 = vector.broadcast %26 : vector<8x1xf32> to vector<8x8xf32>
    %28 = arith.mulf %23, %27 : vector<8x8xf32>
    %29 = arith.truncf %28 : vector<8x8xf32> to vector<8x8xbf16>
    %c0_15 = arith.constant 0 : index
    %c0_16 = arith.constant 0 : index
    %30 = vector.load %arg21[%c0_15, %c0_16] : memref<8x128xbf16, #tpu.memory_space<vmem>>, vector<8x32xbf16>
    %cst_17 = arith.constant dense<0.000000e+00> : vector<8x32xf32>
    %31 = tpu.matmul %29, %30, %cst_17 {dimension_numbers = #tpu.dot_dimension_numbers<[1], [0], [0], [1], [0, 0, 1, 1], [], []>} : vector<8x8xbf16>, vector<8x32xbf16>, vector<8x32xf32> -> vector<8x32xf32>
    %32 = arith.truncf %31 : vector<8x32xf32> to vector<8x32xbf16>
    %c0_18 = arith.constant 0 : index
    %c0_19 = arith.constant 0 : index
    %33 = vector.load %arg22[%c0_18, %c0_19] : memref<8x128xbf16, #tpu.memory_space<vmem>>, vector<8x32xbf16>
    tpu.vector_store %arg22[%c0_18, %c0_19], %32 {strides = array<i32>} : memref<8x128xbf16, #tpu.memory_space<vmem>>, vector<8x32xbf16>,
    %34 = vector.extract_strided_slice %14 {offsets = [0, 32], sizes = [8, 32], strides = [1, 1]} : vector<8x128xbf16> to vector<8x32xbf16>
    %c0_20 = arith.constant 0 : index
    %c32 = arith.constant 32 : index
    %35 = vector.load %arg20[%c0_20, %c32] : memref<8x128xbf16, #tpu.memory_space<vmem>>, vector<8x32xbf16>
    %cst_21 = arith.constant dense<0.000000e+00> : vector<8x8xf32>
    %36 = tpu.matmul %34, %35, %cst_21 {dimension_numbers = #tpu.dot_dimension_numbers<[1], [1], [0], [0], [0, 0, 1, 0], [], []>} : vector<8x32xbf16>, vector<8x32xbf16>, vector<8x8xf32> -> vector<8x8xf32>
    %37 = arith.addf %36, %7 : vector<8x8xf32>
    %cst_22 = arith.constant dense<0xFF800000> : vector<8xf32>
    %38 = vector.multi_reduction <maximumf>, %37, %cst_22 [1] : vector<8x8xf32> to vector<8xf32>
    %39 = vector.shape_cast %38 : vector<8xf32> to vector<8x1xf32>
    %40 = vector.broadcast %39 : vector<8x1xf32> to vector<8x8xf32>
    %41 = arith.subf %37, %40 : vector<8x8xf32>
    %42 = math.exp %41 : vector<8x8xf32>
    %cst_23 = arith.constant dense<0.000000e+00> : vector<8xf32>
    %43 = vector.multi_reduction <add>, %42, %cst_23 [1] : vector<8x8xf32> to vector<8xf32>
    %44 = vector.shape_cast %43 : vector<8xf32> to vector<8x1xf32>
    %45 = tpu.reciprocal %44 {approx = true} : vector<8x1xf32> -> vector<8x1xf32>
    %46 = vector.broadcast %45 : vector<8x1xf32> to vector<8x8xf32>
    %47 = arith.mulf %42, %46 : vector<8x8xf32>
    %48 = arith.truncf %47 : vector<8x8xf32> to vector<8x8xbf16>
    %c0_24 = arith.constant 0 : index
    %c32_25 = arith.constant 32 : index
    %49 = vector.load %arg21[%c0_24, %c32_25] : memref<8x128xbf16, #tpu.memory_space<vmem>>, vector<8x32xbf16>
    %cst_26 = arith.constant dense<0.000000e+00> : vector<8x32xf32>
    %50 = tpu.matmul %48, %49, %cst_26 {dimension_numbers = #tpu.dot_dimension_numbers<[1], [0], [0], [1], [0, 0, 1, 1], [], []>} : vector<8x8xbf16>, vector<8x32xbf16>, vector<8x32xf32> -> vector<8x32xf32>
    %51 = arith.truncf %50 : vector<8x32xf32> to vector<8x32xbf16>
    %c0_27 = arith.constant 0 : index
    %c32_28 = arith.constant 32 : index
    %52 = vector.load %arg22[%c0_27, %c32_28] : memref<8x128xbf16, #tpu.memory_space<vmem>>, vector<8x32xbf16>
    tpu.vector_store %arg22[%c0_27, %c32_28], %51 {strides = array<i32>} : memref<8x128xbf16, #tpu.memory_space<vmem>>, vector<8x32xbf16>,
    %53 = vector.extract_strided_slice %14 {offsets = [0, 64], sizes = [8, 32], strides = [1, 1]} : vector<8x128xbf16> to vector<8x32xbf16>
    %c0_29 = arith.constant 0 : index
    %c64 = arith.constant 64 : index
    %54 = vector.load %arg20[%c0_29, %c64] : memref<8x128xbf16, #tpu.memory_space<vmem>>, vector<8x32xbf16>
    %cst_30 = arith.constant dense<0.000000e+00> : vector<8x8xf32>
    %55 = tpu.matmul %53, %54, %cst_30 {dimension_numbers = #tpu.dot_dimension_numbers<[1], [1], [0], [0], [0, 0, 1, 0], [], []>} : vector<8x32xbf16>, vector<8x32xbf16>, vector<8x8xf32> -> vector<8x8xf32>
    %56 = arith.addf %55, %7 : vector<8x8xf32>
    %cst_31 = arith.constant dense<0xFF800000> : vector<8xf32>
    %57 = vector.multi_reduction <maximumf>, %56, %cst_31 [1] : vector<8x8xf32> to vector<8xf32>
    %58 = vector.shape_cast %57 : vector<8xf32> to vector<8x1xf32>
    %59 = vector.broadcast %58 : vector<8x1xf32> to vector<8x8xf32>
    %60 = arith.subf %56, %59 : vector<8x8xf32>
    %61 = math.exp %60 : vector<8x8xf32>
    %cst_32 = arith.constant dense<0.000000e+00> : vector<8xf32>
    %62 = vector.multi_reduction <add>, %61, %cst_32 [1] : vector<8x8xf32> to vector<8xf32>
    %63 = vector.shape_cast %62 : vector<8xf32> to vector<8x1xf32>
    %64 = tpu.reciprocal %63 {approx = true} : vector<8x1xf32> -> vector<8x1xf32>
    %65 = vector.broadcast %64 : vector<8x1xf32> to vector<8x8xf32>
    %66 = arith.mulf %61, %65 : vector<8x8xf32>
    %67 = arith.truncf %66 : vector<8x8xf32> to vector<8x8xbf16>
    %c0_33 = arith.constant 0 : index
    %c64_34 = arith.constant 64 : index
    %68 = vector.load %arg21[%c0_33, %c64_34] : memref<8x128xbf16, #tpu.memory_space<vmem>>, vector<8x32xbf16>
    %cst_35 = arith.constant dense<0.000000e+00> : vector<8x32xf32>
    %69 = tpu.matmul %67, %68, %cst_35 {dimension_numbers = #tpu.dot_dimension_numbers<[1], [0], [0], [1], [0, 0, 1, 1], [], []>} : vector<8x8xbf16>, vector<8x32xbf16>, vector<8x32xf32> -> vector<8x32xf32>
    %70 = arith.truncf %69 : vector<8x32xf32> to vector<8x32xbf16>
    %c0_36 = arith.constant 0 : index
    %c64_37 = arith.constant 64 : index
    %71 = vector.load %arg22[%c0_36, %c64_37] : memref<8x128xbf16, #tpu.memory_space<vmem>>, vector<8x32xbf16>
    tpu.vector_store %arg22[%c0_36, %c64_37], %70 {strides = array<i32>} : memref<8x128xbf16, #tpu.memory_space<vmem>>, vector<8x32xbf16>,
    %72 = vector.extract_strided_slice %14 {offsets = [0, 96], sizes = [8, 32], strides = [1, 1]} : vector<8x128xbf16> to vector<8x32xbf16>
    %c0_38 = arith.constant 0 : index
    %c96 = arith.constant 96 : index
    %73 = vector.load %arg20[%c0_38, %c96] : memref<8x128xbf16, #tpu.memory_space<vmem>>, vector<8x32xbf16>
    %cst_39 = arith.constant dense<0.000000e+00> : vector<8x8xf32>
    %74 = tpu.matmul %72, %73, %cst_39 {dimension_numbers = #tpu.dot_dimension_numbers<[1], [1], [0], [0], [0, 0, 1, 0], [], []>} : vector<8x32xbf16>, vector<8x32xbf16>, vector<8x8xf32> -> vector<8x8xf32>
    %75 = arith.addf %74, %7 : vector<8x8xf32>
    %cst_40 = arith.constant dense<0xFF800000> : vector<8xf32>
    %76 = vector.multi_reduction <maximumf>, %75, %cst_40 [1] : vector<8x8xf32> to vector<8xf32>
    %77 = vector.shape_cast %76 : vector<8xf32> to vector<8x1xf32>
    %78 = vector.broadcast %77 : vector<8x1xf32> to vector<8x8xf32>
    %79 = arith.subf %75, %78 : vector<8x8xf32>
    %80 = math.exp %79 : vector<8x8xf32>
    %cst_41 = arith.constant dense<0.000000e+00> : vector<8xf32>
    %81 = vector.multi_reduction <add>, %80, %cst_41 [1] : vector<8x8xf32> to vector<8xf32>
    %82 = vector.shape_cast %81 : vector<8xf32> to vector<8x1xf32>
    %83 = tpu.reciprocal %82 {approx = true} : vector<8x1xf32> -> vector<8x1xf32>
    %84 = vector.broadcast %83 : vector<8x1xf32> to vector<8x8xf32>
    %85 = arith.mulf %80, %84 : vector<8x8xf32>
    %86 = arith.truncf %85 : vector<8x8xf32> to vector<8x8xbf16>
    %c0_42 = arith.constant 0 : index
    %c96_43 = arith.constant 96 : index
    %87 = vector.load %arg21[%c0_42, %c96_43] : memref<8x128xbf16, #tpu.memory_space<vmem>>, vector<8x32xbf16>
    %cst_44 = arith.constant dense<0.000000e+00> : vector<8x32xf32>
    %88 = tpu.matmul %86, %87, %cst_44 {dimension_numbers = #tpu.dot_dimension_numbers<[1], [0], [0], [1], [0, 0, 1, 1], [], []>} : vector<8x8xbf16>, vector<8x32xbf16>, vector<8x32xf32> -> vector<8x32xf32>
    %89 = arith.truncf %88 : vector<8x32xf32> to vector<8x32xbf16>
    %c0_45 = arith.constant 0 : index
    %c96_46 = arith.constant 96 : index
    %90 = vector.load %arg22[%c0_45, %c96_46] : memref<8x128xbf16, #tpu.memory_space<vmem>>, vector<8x32xbf16>
    tpu.vector_store %arg22[%c0_45, %c96_46], %89 {strides = array<i32>} : memref<8x128xbf16, #tpu.memory_space<vmem>>, vector<8x32xbf16>,
    %c0_47 = arith.constant 0 : index
    %c0_48 = arith.constant 0 : index
    %91 = vector.load %arg22[%c0_47, %c0_48] : memref<8x128xbf16, #tpu.memory_space<vmem>>, vector<8x128xbf16>
    %c0_49 = arith.constant 0 : index
    %c0_50 = arith.constant 0 : index
    %92 = vector.load %arg11[%c0_49, %c0_50] : memref<128x128xbf16, #tpu.memory_space<vmem>>, vector<128x128xbf16>
    %cst_51 = arith.constant dense<0.000000e+00> : vector<8x128xf32>
    %93 = tpu.matmul %91, %92, %cst_51 {dimension_numbers = #tpu.dot_dimension_numbers<[1], [0], [0], [1], [0, 0, 1, 1], [], []>} : vector<8x128xbf16>, vector<128x128xbf16>, vector<8x128xf32> -> vector<8x128xf32>
    %c0_52 = arith.constant 0 : index
    %c0_53 = arith.constant 0 : index
    %94 = vector.load %arg12[%c0_52, %c0_53] : memref<1x128xf32, #tpu.memory_space<vmem>>, vector<1x128xf32>
    %95 = vector.broadcast %94 : vector<1x128xf32> to vector<8x128xf32>
    %96 = arith.addf %93, %95 : vector<8x128xf32>
    %c0_54 = arith.constant 0 : index
    %c0_55 = arith.constant 0 : index
    %97 = vector.load %arg17[%c0_54, %c0_55] : memref<1x128xf32, #tpu.memory_space<vmem>>, vector<1x128xf32>
    %c0_56 = arith.constant 0 : index
    %c0_57 = arith.constant 0 : index
    %98 = vector.load %arg18[%c0_56, %c0_57] : memref<1x128xf32, #tpu.memory_space<vmem>>, vector<1x128xf32>
    %cst_58 = arith.constant dense<0.000000e+00> : vector<8xf32>
    %99 = vector.multi_reduction <add>, %96, %cst_58 [1] : vector<8x128xf32> to vector<8xf32>
    %100 = vector.shape_cast %99 : vector<8xf32> to vector<8x1xf32>
    %cst_59 = arith.constant 1.280000e+02 : f32
    %101 = vector.broadcast %cst_59 : f32 to vector<8x1xf32>
    %102 = arith.divf %100, %101 : vector<8x1xf32>
    %103 = vector.broadcast %102 : vector<8x1xf32> to vector<8x128xf32>
    %104 = arith.subf %96, %103 : vector<8x128xf32>
    %105 = arith.mulf %104, %104 : vector<8x128xf32>
    %cst_60 = arith.constant dense<0.000000e+00> : vector<8xf32>
    %106 = vector.multi_reduction <add>, %105, %cst_60 [1] : vector<8x128xf32> to vector<8xf32>
    %107 = vector.shape_cast %106 : vector<8xf32> to vector<8x1xf32>
    %cst_61 = arith.constant 1.280000e+02 : f32
    %108 = vector.broadcast %cst_61 : f32 to vector<8x1xf32>
    %109 = arith.divf %107, %108 : vector<8x1xf32>
    %cst_62 = arith.constant 9.99999974E-6 : f32
    %110 = vector.broadcast %cst_62 : f32 to vector<8x1xf32>
    %111 = arith.addf %109, %110 : vector<8x1xf32>
    %112 = math.rsqrt %111 : vector<8x1xf32>
    %113 = vector.broadcast %112 : vector<8x1xf32> to vector<8x128xf32>
    %114 = arith.mulf %104, %113 : vector<8x128xf32>
    %115 = vector.broadcast %97 : vector<1x128xf32> to vector<8x128xf32>
    %116 = arith.mulf %114, %115 : vector<8x128xf32>
    %117 = vector.broadcast %98 : vector<1x128xf32> to vector<8x128xf32>
    %118 = arith.addf %116, %117 : vector<8x128xf32>
    %119 = arith.addf %1, %118 : vector<8x128xf32>
    %120 = arith.truncf %119 : vector<8x128xf32> to vector<8x128xbf16>
    %c0_63 = arith.constant 0 : index
    %c0_64 = arith.constant 0 : index
    %121 = vector.load %arg13[%c0_63, %c0_64] : memref<128x256xbf16, #tpu.memory_space<vmem>>, vector<128x256xbf16>
    %cst_65 = arith.constant dense<0.000000e+00> : vector<8x256xf32>
    %122 = tpu.matmul %120, %121, %cst_65 {dimension_numbers = #tpu.dot_dimension_numbers<[1], [0], [0], [1], [0, 0, 1, 1], [], []>} : vector<8x128xbf16>, vector<128x256xbf16>, vector<8x256xf32> -> vector<8x256xf32>
    %c0_66 = arith.constant 0 : index
    %c0_67 = arith.constant 0 : index
    %123 = vector.load %arg14[%c0_66, %c0_67] : memref<1x256xf32, #tpu.memory_space<vmem>>, vector<1x256xf32>
    %124 = vector.broadcast %123 : vector<1x256xf32> to vector<8x256xf32>
    %125 = arith.addf %122, %124 : vector<8x256xf32>
    %cst_68 = arith.constant 0.000000e+00 : f32
    %126 = vector.broadcast %cst_68 : f32 to vector<8x256xf32>
    %127 = arith.maximumf %125, %126 : vector<8x256xf32>
    %128 = arith.truncf %127 : vector<8x256xf32> to vector<8x256xbf16>
    %c0_69 = arith.constant 0 : index
    %c0_70 = arith.constant 0 : index
    %129 = vector.load %arg15[%c0_69, %c0_70] : memref<256x128xbf16, #tpu.memory_space<vmem>>, vector<256x128xbf16>
    %cst_71 = arith.constant dense<0.000000e+00> : vector<8x128xf32>
    %130 = tpu.matmul %128, %129, %cst_71 {dimension_numbers = #tpu.dot_dimension_numbers<[1], [0], [0], [1], [0, 0, 1, 1], [], []>} : vector<8x256xbf16>, vector<256x128xbf16>, vector<8x128xf32> -> vector<8x128xf32>
    %c0_72 = arith.constant 0 : index
    %c0_73 = arith.constant 0 : index
    %131 = vector.load %arg16[%c0_72, %c0_73] : memref<1x128xf32, #tpu.memory_space<vmem>>, vector<1x128xf32>
    %132 = vector.broadcast %131 : vector<1x128xf32> to vector<8x128xf32>
    %133 = arith.addf %130, %132 : vector<8x128xf32>
    %cst_74 = arith.constant dense<0.000000e+00> : vector<8xf32>
    %134 = vector.multi_reduction <add>, %133, %cst_74 [1] : vector<8x128xf32> to vector<8xf32>
    %135 = vector.shape_cast %134 : vector<8xf32> to vector<8x1xf32>
    %cst_75 = arith.constant 1.280000e+02 : f32
    %136 = vector.broadcast %cst_75 : f32 to vector<8x1xf32>
    %137 = arith.divf %135, %136 : vector<8x1xf32>
    %138 = vector.broadcast %137 : vector<8x1xf32> to vector<8x128xf32>
    %139 = arith.subf %133, %138 : vector<8x128xf32>
    %140 = arith.mulf %139, %139 : vector<8x128xf32>
    %cst_76 = arith.constant dense<0.000000e+00> : vector<8xf32>
    %141 = vector.multi_reduction <add>, %140, %cst_76 [1] : vector<8x128xf32> to vector<8xf32>
    %142 = vector.shape_cast %141 : vector<8xf32> to vector<8x1xf32>
    %cst_77 = arith.constant 1.280000e+02 : f32
    %143 = vector.broadcast %cst_77 : f32 to vector<8x1xf32>
    %144 = arith.divf %142, %143 : vector<8x1xf32>
    %cst_78 = arith.constant 9.99999974E-6 : f32
    %145 = vector.broadcast %cst_78 : f32 to vector<8x1xf32>
    %146 = arith.addf %144, %145 : vector<8x1xf32>
    %147 = math.rsqrt %146 : vector<8x1xf32>
    %148 = vector.broadcast %147 : vector<8x1xf32> to vector<8x128xf32>
    %149 = arith.mulf %139, %148 : vector<8x128xf32>
    %150 = vector.broadcast %97 : vector<1x128xf32> to vector<8x128xf32>
    %151 = arith.mulf %149, %150 : vector<8x128xf32>
    %152 = vector.broadcast %98 : vector<1x128xf32> to vector<8x128xf32>
    %153 = arith.addf %151, %152 : vector<8x128xf32>
    %154 = arith.addf %119, %153 : vector<8x128xf32>
    %c0_79 = arith.constant 0 : index
    %c0_80 = arith.constant 0 : index
    %c0_81 = arith.constant 0 : index
    %155 = vector.load %arg19[%c0_79, %c0_80, %c0_81] : memref<1x8x128xf32, #tpu.memory_space<vmem>>, vector<1x8x128xf32>
    %156 = vector.shape_cast %155 : vector<1x8x128xf32> to vector<8x128xf32>
    %157 = vector.shape_cast %154 : vector<8x128xf32> to vector<1x8x128xf32>
    tpu.vector_store %arg19[%c0_79, %c0_80, %c0_81], %157 {strides = array<i32>} : memref<1x8x128xf32, #tpu.memory_space<vmem>>, vector<1x8x128xf32>,
    return
  }
  func.func @transform_0(%arg0: i32, %arg1: i32) -> (i32, i32, i32) {
    %c0_i32 = arith.constant 0 : i32
    %c0_i32_0 = arith.constant 0 : i32
    return %arg0, %arg1, %c0_i32 : i32, i32, i32
  }
  func.func @transform_1(%arg0: i32, %arg1: i32) -> (i32, i32, i32) {
    %c0_i32 = arith.constant 0 : i32
    %c0_i32_0 = arith.constant 0 : i32
    %c0_i32_1 = arith.constant 0 : i32
    return %arg0, %c0_i32, %c0_i32_0 : i32, i32, i32
  }
  func.func @transform_2(%arg0: i32, %arg1: i32) -> (i32, i32, i32) {
    %c0_i32 = arith.constant 0 : i32
    %c0_i32_0 = arith.constant 0 : i32
    return %arg0, %arg1, %c0_i32 : i32, i32, i32
  }
  func.func @transform_3(%arg0: i32, %arg1: i32) -> (i32, i32) {
    %c0_i32 = arith.constant 0 : i32
    %c0_i32_0 = arith.constant 0 : i32
    %c0_i32_1 = arith.constant 0 : i32
    return %c0_i32, %c0_i32_0 : i32, i32
  }
  func.func @transform_4(%arg0: i32, %arg1: i32) -> (i32, i32) {
    %c0_i32 = arith.constant 0 : i32
    %c0_i32_0 = arith.constant 0 : i32
    %c0_i32_1 = arith.constant 0 : i32
    return %c0_i32, %c0_i32_0 : i32, i32
  }
  func.func @transform_5(%arg0: i32, %arg1: i32) -> (i32, i32) {
    %c0_i32 = arith.constant 0 : i32
    %c0_i32_0 = arith.constant 0 : i32
    %c0_i32_1 = arith.constant 0 : i32
    return %c0_i32, %c0_i32_0 : i32, i32
  }
  func.func @transform_6(%arg0: i32, %arg1: i32) -> (i32, i32) {
    %c0_i32 = arith.constant 0 : i32
    %c0_i32_0 = arith.constant 0 : i32
    %c0_i32_1 = arith.constant 0 : i32
    return %c0_i32, %c0_i32_0 : i32, i32
  }
  func.func @transform_7(%arg0: i32, %arg1: i32) -> (i32, i32) {
    %c0_i32 = arith.constant 0 : i32
    %c0_i32_0 = arith.constant 0 : i32
    %c0_i32_1 = arith.constant 0 : i32
    return %c0_i32, %c0_i32_0 : i32, i32
  }
  func.func @transform_8(%arg0: i32, %arg1: i32) -> (i32, i32) {
    %c0_i32 = arith.constant 0 : i32
    %c0_i32_0 = arith.constant 0 : i32
    %c0_i32_1 = arith.constant 0 : i32
    return %c0_i32, %c0_i32_0 : i32, i32
  }
  func.func @transform_9(%arg0: i32, %arg1: i32) -> (i32, i32) {
    %c0_i32 = arith.constant 0 : i32
    %c0_i32_0 = arith.constant 0 : i32
    %c0_i32_1 = arith.constant 0 : i32
    return %c0_i32, %c0_i32_0 : i32, i32
  }
  func.func @transform_10(%arg0: i32, %arg1: i32) -> (i32, i32) {
    %c0_i32 = arith.constant 0 : i32
    %c0_i32_0 = arith.constant 0 : i32
    %c0_i32_1 = arith.constant 0 : i32
    return %c0_i32, %c0_i32_0 : i32, i32
  }
  func.func @transform_11(%arg0: i32, %arg1: i32) -> (i32, i32) {
    %c0_i32 = arith.constant 0 : i32
    %c0_i32_0 = arith.constant 0 : i32
    %c0_i32_1 = arith.constant 0 : i32
    return %c0_i32, %c0_i32_0 : i32, i32
  }
  func.func @transform_12(%arg0: i32, %arg1: i32) -> (i32, i32) {
    %c0_i32 = arith.constant 0 : i32
    %c0_i32_0 = arith.constant 0 : i32
    %c0_i32_1 = arith.constant 0 : i32
    return %c0_i32, %c0_i32_0 : i32, i32
  }
  func.func @transform_13(%arg0: i32, %arg1: i32) -> (i32, i32) {
    %c0_i32 = arith.constant 0 : i32
    %c0_i32_0 = arith.constant 0 : i32
    %c0_i32_1 = arith.constant 0 : i32
    return %c0_i32, %c0_i32_0 : i32, i32
  }
  func.func @transform_14(%arg0: i32, %arg1: i32) -> (i32, i32) {
    %c0_i32 = arith.constant 0 : i32
    %c0_i32_0 = arith.constant 0 : i32
    %c0_i32_1 = arith.constant 0 : i32
    return %c0_i32, %c0_i32_0 : i32, i32
  }
  func.func @transform_15(%arg0: i32, %arg1: i32) -> (i32, i32) {
    %c0_i32 = arith.constant 0 : i32
    %c0_i32_0 = arith.constant 0 : i32
    %c0_i32_1 = arith.constant 0 : i32
    return %c0_i32, %c0_i32_0 : i32, i32
  }
  func.func @transform_16(%arg0: i32, %arg1: i32) -> (i32, i32) {
    %c0_i32 = arith.constant 0 : i32
    %c0_i32_0 = arith.constant 0 : i32
    %c0_i32_1 = arith.constant 0 : i32
    return %c0_i32, %c0_i32_0 : i32, i32
  }
  func.func @transform_17(%arg0: i32, %arg1: i32) -> (i32, i32, i32) {
    %c0_i32 = arith.constant 0 : i32
    %c0_i32_0 = arith.constant 0 : i32
    return %arg0, %arg1, %c0_i32 : i32, i32, i32
  }
}

</mosaic_0001>

<bundles_post_ra>
// kernel: tpu_custom_call.1
= control target key start
LH: loop header
LB: loop body
LE: loop exit
PB: predicated region body
PF: predicated region fallthrough
CT: control target
= control target key end

     0   :  { %s3870_s0 = inlined_call_operand.hbm [shape: f32[2,8,128], index: 0, kind: input, shape index: {}]   ;;  %s3871_s1 = inlined_call_operand.hbm [shape: bf16[2,8,128], index: 1, kind: input, shape index: {}]   ;;  %s3872_s2 = inlined_call_operand.hbm [shape: bf16[2,8,8], index: 2, kind: input, shape index: {}]   ;;  %s3873_s3 = inlined_call_operand.hbm [shape: bf16[128,128], index: 3, kind: input, shape index: {}]   ;;  %s3874_s4 = inlined_call_operand.vmem [shape: f32[1,128], index: 4, kind: input, shape index: {}]   ;;  %s3875_s5 = inlined_call_operand.hbm [shape: bf16[128,128], index: 5, kind: input, shape index: {}]   ;;  %s3876_s6 = inlined_call_operand.vmem [shape: f32[1,128], index: 6, kind: input, shape index: {}]   ;;  %s3877_s7 = inlined_call_operand.hbm [shape: bf16[128,128], index: 7, kind: input, shape index: {}]   ;;  %s3878_s8 = inlined_call_operand.vmem [shape: f32[1,128], index: 8, kind: input, shape index: {}]   ;;  %s3879_s9 = inlined_call_operand.hbm [shape: bf16[128,128], index: 9, kind: input, shape index: {}]   ;;  %s3880_s10 = inlined_call_operand.vmem [shape: f32[1,128], index: 10, kind: input, shape index: {}]   ;;  %s3881_s11 = inlined_call_operand.hbm [shape: bf16[128,256], index: 11, kind: input, shape index: {}]   ;;  %s3882_s12 = inlined_call_operand.vmem [shape: f32[1,256], index: 12, kind: input, shape index: {}]   ;;  %s3883_s13 = inlined_call_operand.hbm [shape: bf16[256,128], index: 13, kind: input, shape index: {}]   ;;  %s3884_s14 = inlined_call_operand.vmem [shape: f32[1,128], index: 14, kind: input, shape index: {}]   ;;  %s3885_s15 = inlined_call_operand.vmem [shape: f32[1,128], index: 15, kind: input, shape index: {}]   ;;  %s3886_s16 = inlined_call_operand.vmem [shape: f32[1,128], index: 16, kind: input, shape index: {}]   ;;  %s3887_s17 = inlined_call_operand.hbm [shape: f32[2,8,128], index: 17, kind: output, shape index: {}]  }
   0x1   :  { %3918 = sst [smem:[#allocation35_spill]] %s3870_s0 }
   0x2   :  { %3919 = sst [smem:[#allocation36_spill]] %s3871_s1 }
   0x3   :  { %3920 = sst [smem:[#allocation37_spill]] %s3873_s3 }
   0x4   :  { %3921 = sst [smem:[#allocation38_spill]] %s3874_s4 }
   0x5   :  { %3922 = sst [smem:[#allocation39_spill]] %s3877_s7 }
   0x6   :  { %3923 = sst [smem:[#allocation40_spill]] %s3878_s8 }
   0x7   :  { %3924 = sst [smem:[#allocation41_spill]] %s3880_s10 }
   0x8   :  { %3925 = sst [smem:[#allocation42_spill]] %s3881_s11 }
   0x9   :  { %3926 = sst [smem:[#allocation43_spill]] %s3882_s12 }
   0xa   :  { %3927 = sst [smem:[#allocation44_spill]] %s3884_s14 }
   0xb   :  { %3928 = sst [smem:[#allocation45_spill]] %s3885_s15 }
   0xc   :  { %3929 = sst [smem:[#allocation46_spill]] %s3886_s16 }
   0xd   :  { %3930 = sst [smem:[#allocation47_spill]] %s3887_s17 }
   0xe   :  { %22 = vsyncpa [#allocation6], 0 }
   0xf   :  { %24 = vsyncpa [#allocation6 + $0x1], 0 }
  0x10   :  { %25 = vsyncpa [#allocation9], 0 }
  0x11   :  { %27 = vsyncpa [#allocation9 + $0x1], 0 }
  0x12   :  { %28 = vsyncpa [#allocation12], 0 }
  0x13   :  { %29 = vsyncpa [#allocation15], 0 }
  0x14   :  { %30 = vsyncpa [#allocation18], 0 }
  0x15   :  { %31 = vsyncpa [#allocation7], 0 }
  0x16   :  { %33 = vsyncpa [#allocation7 + $0x1], 0  ;;  %s3298_s24 = smov 0   ;;  %s3300_s25 = smov 0  }
  0x17   :  { %s3302_s26 = smov 0   ;;  %s3304_s27 = smov 0  }
  0x18   :  { %s3306_s28 = smov 0   ;;  %s3308_s29 = smov 0  }
  0x19 LB: > { %3931 = sst [smem:[#allocation27_spill]] %s3166_s24  ;;  %s3329_s0 = sadd.s32 4294967295, %s3186_s29   ;;  %s3186_s29 = sphi %s3308_s29, %s39_s29   ;;  %s3182_s28 = sphi %s3306_s28, %s3992_s28   ;;  %s3178_s27 = sphi %s3304_s27, %s3991_s27   ;;  %s3174_s26 = sphi %s3302_s26, %s3987_s26   ;;  %s3170_s25 = sphi %s3300_s25, %s3990_s25   ;;  %s3166_s24 = sphi %s3298_s24, %s3989_s24  }
  0x1a   : > { %3932 = sst [smem:[#allocation28_spill]] %s3174_s26  ;;  %p2267_p0 = scmp.ge.s32.totalorder %s3186_s29, 1 }
  0x1b   : > { %3933 = sst [smem:[#allocation29_spill]] %s3178_s27  ;;  %p3891_p1 = scmp.eq.s32.totalorder %s3329_s0, 0 }
  0x1c   : > { %3934 = sst [smem:[#allocation30_spill]] %s3186_s29  ;;  %p460_p2 = scmp.lt.s32.totalorder %s3186_s29, 3 }
  0x1d   : > { %s3188_s18 = smov [#allocation11]   ;;  %s3189_s20 = smov [#allocation14]  }
  0x1e   : > { %p3334_p3 = pnand %p2267_p0, %p460_p2  ;;  %s472_s19 = sshll.u32 %s3188_s18, 4  ;;  %s3338_s19 = int_to_ptr.vmem [resolvable:$true] %s472_s19 }
  0x1f   : > { %s504_s21 = sshll.u32 %s3189_s20, 4  ;;  %s3190_s22 = smov [#allocation17]   ;;  %s3349_s21 = int_to_ptr.vmem [resolvable:$true] %s504_s21 }
  0x20   : > { %s3935_s30 = scalar_select %p3334_p3, 1, 0 }
  0x21   : > { %p2621_p4 = pneg %p3334_p3  ;;  %s3351_s23 = sshll.u32 %s3190_s22, 4  ;;  %s537_s23 = int_to_ptr.vmem [resolvable:$true] %s3351_s23 }
  0x22   : > { %s3937_s3 = sld [smem:[#allocation37_spill]] }
  0x23   : > { %p3345_p6 = pnand %p2621_p4, %p3891_p1 }
  0x25   : > { %s3936_s1 = scalar_select %p3345_p6, 1, 0 }
  0x26   : > { %p3361_p8 = pneg %p3345_p6 }
  0x28   : > { %s2830_s27 = scalar_lea.hbm %s3937_s3, 1024 }
  0x29   : > { %p2831_p7 = scmp.ne.s32.totalorder %s3937_s3, %s2830_s27  ;;  %p2837_p11 = scmp.lt.u32.totalorder %s2830_s27, %s3937_s3 }
  0x2a   : > { %s3938_s16 = scalar_select %p3361_p8, 1, 0 }
  0x2b   : > { %p2833_p9 = pnand %p3361_p8, %p2831_p7 }
  0x2d   : > { %p2834_p10 = pneg %p2833_p9 }
  0x2f   : > { %p2839_p12 = pnand %p2837_p11, %p2834_p10 }
  0x31   : > { %2842 = shalt.err (!%p2839_p12)
}
  0x32   : > { %s2843_s12 = scalar_lea.vmem %s3338_s19, 1024  ;;  %p2851_p4 = scmp.lt.s32.totalorder %s3338_s19, %s3338_s19 }
  0x33   : > { %p2844_p13 = scmp.ne.s32.totalorder %s3338_s19, %s2843_s12  ;;  %p2852_p5 = scmp.lt.s32.totalorder %s2843_s12, %s2843_s12 }
  0x35   : > { %p2846_p0 = pnand %p2844_p13, %p3361_p8  ;;  %p2853_p7 = por %p2852_p5, %p2851_p4 }
  0x37   : > { %p2847_p2 = pneg %p2846_p0 }
  0x39   : > { %p2854_p9 = pnand %p2853_p7, %p2847_p2 }
  0x3b   : > { %2857 = shalt.err (!%p2854_p9)
}
  0x3c   : > { %s3893_s14 = smov 64   ;;  %s3895_s17 = smov 4  }
  0x3d   : > { %2624 = dma.hbm_to_vmem [thread:$0]  (!%p3345_p6), %s3937_s3, 1024, %s3338_s19, [#allocation12], %s3893_s14, %s3893_s14, %s3895_s17  }
  0x3e   : > { %s3939_s7 = sld [smem:[#allocation39_spill]] }
  0x44   : > { %s2858_s12 = scalar_lea.hbm %s3939_s7, 1024 }
  0x45   : > { %p2859_p5 = scmp.ne.s32.totalorder %s3939_s7, %s2858_s12  ;;  %p2865_p12 = scmp.lt.u32.totalorder %s2858_s12, %s3939_s7 }
  0x47   : > { %p2861_p10 = pnand %p2859_p5, %p3361_p8 }
  0x49   : > { %p2862_p11 = pneg %p2861_p10 }
  0x4b   : > { %p2867_p13 = pnand %p2865_p12, %p2862_p11 }
  0x4d   : > { %2870 = shalt.err (!%p2867_p13)
}
  0x4e   : > { %s2871_s19 = scalar_lea.vmem %s3349_s21, 1024  ;;  %p2879_p7 = scmp.lt.s32.totalorder %s3349_s21, %s3349_s21 }
  0x4f   : > { %p2872_p0 = scmp.ne.s32.totalorder %s3349_s21, %s2871_s19  ;;  %p2880_p9 = scmp.lt.s32.totalorder %s2871_s19, %s2871_s19 }
  0x51   : > { %p2874_p2 = pnand %p2872_p0, %p3361_p8  ;;  %p2881_p5 = por %p2880_p9, %p2879_p7 }
  0x53   : > { %p2875_p4 = pneg %p2874_p2 }
  0x55   : > { %p2882_p10 = pnand %p2881_p5, %p2875_p4 }
  0x57   : > { %2885 = shalt.err (!%p2882_p10)
}
  0x58   : > { %2630 = dma.hbm_to_vmem [thread:$0]  (!%p3345_p6), %s3939_s7, 1024, %s3349_s21, [#allocation15], %s3893_s14, %s3893_s14, %s3895_s17  }
  0x59   : > { %s3940_s11 = sld [smem:[#allocation42_spill]] }
  0x5f   : > { %s2886_s27 = scalar_lea.hbm %s3940_s11, 2048 }
  0x60   : > { %p2887_p11 = scmp.ne.s32.totalorder %s3940_s11, %s2886_s27  ;;  %p2893_p0 = scmp.lt.u32.totalorder %s2886_s27, %s3940_s11 }
  0x62   : > { %p2889_p12 = pnand %p2887_p11, %p3361_p8 }
  0x64   : > { %p2890_p13 = pneg %p2889_p12 }
  0x66   : > { %p2895_p2 = pnand %p2893_p0, %p2890_p13 }
  0x68   : > { %2898 = shalt.err (!%p2895_p2)
}
  0x69   : > { %s2899_s19 = scalar_lea.vmem %s537_s23, 2048  ;;  %p2907_p5 = scmp.lt.s32.totalorder %s537_s23, %s537_s23 }
  0x6a   : > { %p2900_p4 = scmp.ne.s32.totalorder %s537_s23, %s2899_s19  ;;  %p2908_p10 = scmp.lt.s32.totalorder %s2899_s19, %s2899_s19 }
  0x6c   : > { %p2902_p7 = pnand %p2900_p4, %p3361_p8  ;;  %p2909_p1 = por %p2908_p10, %p2907_p5 }
  0x6e   : > { %p2903_p9 = pneg %p2902_p7 }
  0x70   : > { %p2910_p3 = pnand %p2909_p1, %p2903_p9 }
  0x72   : > { %2913 = shalt.err (!%p2910_p3)
}
  0x73   : > { %s3193_s21 = smov 128   ;;  %s3194_s4 = smov 8  }
  0x74   : > { %2636 = dma.hbm_to_vmem [thread:$0]  (!%p3345_p6), %s3940_s11, 2048, %s537_s23, [#allocation18], %s3193_s21, %s3193_s21, %s3194_s4  }
  0x75   : > { %s2266_s15 = sadd.s32 4294967294, %s3186_s29   ;;  %s51_s27 = sadd.s32 1, %s3182_s28 }
  0x76   : > { %s60_s18 = sadd.s32 1, %s3174_s26  ;;  %p53_p1 = scmp.ge.s32.totalorder %s51_s27, 2 }
  0x77   : > { %p67_p3 = scmp.ne.s32.totalorder %s3174_s26, %s3170_s25  ;;  %p68_p11 = scmp.eq.s32.totalorder %s3186_s29, 0 }
  0x78   : > { %p73_p12 = scmp.ne.s32.totalorder %s3170_s25, %s3166_s24  ;;  %s3994_s27 = smov (%p53_p1, %s51_s27), 0 }
  0x79   : > { %3941 = sst [smem:[#allocation31_spill]] %s3994_s27  ;;  %p69_p13 = por %p68_p11, %p67_p3 }
  0x7a   : > { %p3942_p0 = scmp.eq.s32.totalorder %s3329_s0, 0  ;;  %s55_s23 = ssub.s32 %s3182_s28, %s3994_s27 }
  0x7b   : > { %p447_p4 = scmp.eq.s32.totalorder %s3329_s0, 1  ;;  %p58_p7 = scmp.eq.s32.totalorder %s55_s23, 0 }
  0x7c   : > { %p3442_p2 = por %p3942_p0, %p73_p12  ;;  %p453_p9 = scmp.eq.s32.totalorder %s2266_s15, 1 }
  0x7d   : > { %p3449_p5 = por %p447_p4, %p67_p3  ;;  %p2660_p10 = scmp.lt.s32.totalorder %s3186_s29, 2 }
  0x7e   : > { %s3943_s20 = scalar_select %p3442_p2, 1, 0 }
  0x7f   : > { %s3944_s22 = scalar_select %p3449_p5, 1, 0 }
  0x80   : > { %s3455_s12 = scalar_select %p58_p7, %s3174_s26, %s60_s18  }
  0x81   : > { %3945 = sst [smem:[#allocation32_spill]] %s3944_s22  ;;  %p3457_p1 = por %p453_p9, %p73_p12 }
  0x82   : > { %3946 = sst [smem:[#allocation33_spill]] %s3455_s12  ;;  %s3462_s21 = sand.u32 1, %s3174_s26  }
  0x83   : > { %s3947_s19 = scalar_select %p3457_p1, 1, 0 }
  0x84   : > { %p3464_p11 = pnand %p2660_p10, %p69_p13  ;;  %s594_s8 = sand.u32 1, %s3186_s29  }
  0x85   : > { %3948 = sst [smem:[#allocation34_spill]] %s3947_s19  ;;  %s3898_s10 = sshll.u32 %s3462_s21, 2 }
  0x86   : > { %s3949_s4 = scalar_select %p3464_p11, 1, 0 }
  0x87   : > { %s3899_s15 = sshll.u32 %s3182_s28, 6  ;;  %s598_s23 = scalar_lea.vmem [#allocation8], %s3898_s10 }
  0x88   : > { %s605_s18 = sshll.u32 %s598_s23, 4  ;;  %s3950_s3 = sld [smem:[#allocation36_spill]]  ;;  %s3480_s18 = int_to_ptr.vmem [resolvable:$true] %s605_s18 }
  0x89   : > { %s3482_s11 = scalar_lea.sflag [#allocation9], %s594_s8  ;;  %p3488_p12 = pneg %p3464_p11 }
  0x8b   : > { %s3951_s10 = scalar_select %p3488_p12, 1, 0 }
  0x8e   : > { %s3478_s7 = scalar_lea.hbm %s3950_s3, %s3899_s15  ;;  %s2919_s23 = scalar_lea.hbm %s3950_s3, 128 }
  0x8f   : > { %s2914_s27 = scalar_lea.hbm %s3478_s7, 64  ;;  %p2920_p4 = scmp.lt.u32.totalorder %s3478_s7, %s3950_s3 }
  0x90   : > { %p2915_p3 = scmp.ne.s32.totalorder %s3478_s7, %s2914_s27  ;;  %p2921_p7 = scmp.lt.u32.totalorder %s2919_s23, %s2914_s27 }
  0x91   : > { %p2923_p10 = scmp.lt.u32.totalorder %s2914_s27, %s3478_s7 }
  0x92   : > { %p2917_p13 = pnand %p3488_p12, %p2915_p3  ;;  %p2922_p9 = por %p2921_p7, %p2920_p4 }
  0x94   : > { %p2918_p0 = pneg %p2917_p13  ;;  %p2924_p1 = por %p2923_p10, %p2922_p9 }
  0x96   : > { %p2925_p5 = pnand %p2924_p1, %p2918_p0 }
  0x98   : > { %2928 = shalt.err (!%p2925_p5)
}
  0x99   : > { %s2929_s8 = scalar_lea.vmem %s3480_s18, 64  ;;  %s3195_s14 = smov [#allocation8]  }
  0x9a   : > { %p2930_p3 = scmp.ne.s32.totalorder %s3480_s18, %s2929_s8  ;;  %s2934_s17 = sshll.u32 %s3195_s14, 4  ;;  %s2935_s17 = int_to_ptr.vmem [resolvable:$false] %s2934_s17 }
  0x9b   : > { %s2936_s12 = scalar_lea.vmem %s2935_s17, 128  ;;  %p2937_p6 = scmp.lt.s32.totalorder %s3480_s18, %s2935_s17 }
  0x9c   : > { %p2932_p13 = pnand %p2930_p3, %p3488_p12  ;;  %p2938_p8 = scmp.lt.s32.totalorder %s2936_s12, %s2929_s8 }
  0x9e   : > { %p2933_p2 = pneg %p2932_p13  ;;  %p2939_p4 = por %p2938_p8, %p2937_p6 }
  0xa0   : > { %p2940_p7 = pnand %p2939_p4, %p2933_p2 }
  0xa2   : > { %2943 = shalt.err (!%p2940_p7)
}
  0xa3   : > { %2646 = dma.hbm_to_vmem [thread:$0]  (!%p3464_p11), %s3478_s7, 64, %s3480_s18, %s3482_s11  }
  0xa4   : > { %s3952_s27 = sshll.u32 %s3182_s28, 6  ;;  %s3196_s3 = smov [#allocation13]  }
  0xa5   : > { %s3517_s14 = scalar_lea.hbm %s3872_s2, %s3952_s27  ;;  %s488_s17 = sshll.u32 %s3196_s3, 4  ;;  %s489_s17 = int_to_ptr.vmem [resolvable:$true] %s488_s17 }
  0xa6   : > { %s3197_s8 = smov [#allocation16]   ;;  %s2944_s19 = scalar_lea.hbm %s3875_s5, 1024 }
  0xa7   : > { %s520_s12 = sshll.u32 %s3197_s8, 4  ;;  %p2945_p6 = scmp.ne.s32.totalorder %s3875_s5, %s2944_s19  ;;  %s3519_s12 = int_to_ptr.vmem [resolvable:$true] %s520_s12 }
  0xa8   : > { %p3953_p8 = scmp.ne.s32.totalorder %s3938_s16, 0  ;;  %p2951_p1 = scmp.lt.u32.totalorder %s2944_s19, %s3875_s5 }
  0xaa   : > { %p2947_p2 = pnand %p2945_p6, %p3953_p8 }
  0xac   : > { %p2948_p5 = pneg %p2947_p2 }
  0xae   : > { %p2953_p0 = pnand %p2951_p1, %p2948_p5 }
  0xb0   : > { %2956 = shalt.err (!%p2953_p0)
}
  0xb1   : > { %s2957_s3 = scalar_lea.vmem %s489_s17, 1024  ;;  %p2965_p13 = scmp.lt.s32.totalorder %s489_s17, %s489_s17 }
  0xb2   : > { %p2958_p9 = scmp.ne.s32.totalorder %s489_s17, %s2957_s3  ;;  %p2966_p4 = scmp.lt.s32.totalorder %s2957_s3, %s2957_s3 }
  0xb4   : > { %p2960_p10 = pnand %p2958_p9, %p3953_p8  ;;  %p2967_p7 = por %p2966_p4, %p2965_p13 }
  0xb6   : > { %p2961_p3 = pneg %p2960_p10 }
  0xb8   : > { %p2968_p11 = pnand %p2967_p7, %p2961_p3 }
  0xba   : > { %2971 = shalt.err (!%p2968_p11)
}
  0xbb   : > { %p3954_p6 = scmp.ne.s32.totalorder %s3936_s1, 0  ;;  %s3955_s24 = smov 4  }
  0xbc   : > { %s3956_s26 = smov 64   ;;  %s2972_s15 = scalar_lea.hbm %s3879_s9, 1024 }
  0xbd   : > { %2627 = dma.hbm_to_vmem [thread:$0]  (!%p3954_p6), %s3875_s5, 1024, %s489_s17, [#allocation12], %s3956_s26, %s3956_s26, %s3955_s24  }
  0xbe   : > { %p2973_p2 = scmp.ne.s32.totalorder %s3879_s9, %s2972_s15  ;;  %p2979_p1 = scmp.lt.u32.totalorder %s2972_s15, %s3879_s9 }
  0xc0   : > { %p2975_p11 = pnand %p2973_p2, %p3953_p8 }
  0xc2   : > { %p2976_p5 = pneg %p2975_p11 }
  0xc4   : > { %p2981_p0 = pnand %p2979_p1, %p2976_p5 }
  0xc6   : > { %2984 = shalt.err (!%p2981_p0)
}
  0xc7   : > { %s2985_s17 = scalar_lea.vmem %s3519_s12, 1024  ;;  %p2993_p13 = scmp.lt.s32.totalorder %s3519_s12, %s3519_s12 }
  0xc8   : > { %p2986_p9 = scmp.ne.s32.totalorder %s3519_s12, %s2985_s17  ;;  %p2994_p4 = scmp.lt.s32.totalorder %s2985_s17, %s2985_s17 }
  0xca   : > { %p2988_p10 = pnand %p2986_p9, %p3953_p8  ;;  %p2995_p7 = por %p2994_p4, %p2993_p13 }
  0xcc   : > { %p2989_p3 = pneg %p2988_p10 }
  0xce   : > { %p2996_p2 = pnand %p2995_p7, %p2989_p3 }
  0xd0   : > { %2999 = shalt.err (!%p2996_p2)
}
  0xd1   : > { %2633 = dma.hbm_to_vmem [thread:$0]  (!%p3954_p6), %s3879_s9, 1024, %s3519_s12, [#allocation15], %s3956_s26, %s3956_s26, %s3955_s24  }
  0xd2   : > { %s3198_s22 = smov [#allocation19]   ;;  %s2275_s27 = sshll.u32 %s3462_s21, 3 }
  0xd3   : > { %s552_s19 = sshll.u32 %s3198_s22, 4  ;;  %s3000_s8 = scalar_lea.hbm %s3883_s13, 2048  ;;  %s553_s19 = int_to_ptr.vmem [resolvable:$true] %s552_s19 }
  0xd4   : > { %p3001_p11 = scmp.ne.s32.totalorder %s3883_s13, %s3000_s8  ;;  %p3007_p0 = scmp.lt.u32.totalorder %s3000_s8, %s3883_s13 }
  0xd6   : > { %p3003_p5 = pnand %p3001_p11, %p3953_p8 }
  0xd8   : > { %p3004_p1 = pneg %p3003_p5 }
  0xda   : > { %p3009_p9 = pnand %p3007_p0, %p3004_p1 }
  0xdc   : > { %3012 = shalt.err (!%p3009_p9)
}
  0xdd   : > { %s3013_s12 = scalar_lea.vmem %s553_s19, 2048  ;;  %p3021_p4 = scmp.lt.s32.totalorder %s553_s19, %s553_s19 }
  0xde   : > { %p3014_p10 = scmp.ne.s32.totalorder %s553_s19, %s3013_s12  ;;  %p3022_p7 = scmp.lt.s32.totalorder %s3013_s12, %s3013_s12 }
  0xe0   : > { %p3016_p3 = pnand %p3014_p10, %p3953_p8  ;;  %p3023_p2 = por %p3022_p7, %p3021_p4 }
  0xe2   : > { %p3017_p13 = pneg %p3016_p3 }
  0xe4   : > { %p3024_p12 = pnand %p3023_p2, %p3017_p13 }
  0xe6   : > { %3027 = shalt.err (!%p3024_p12)
}
  0xe7   : > { %2639 = dma.hbm_to_vmem [thread:$0]  (!%p3954_p6), %s3883_s13, 2048, %s553_s19, [#allocation18], %s3956_s26, %s3956_s26, %s3955_s24  }
  0xe8   : > { %s2276_s16 = sshll.u32 %s3182_s28, 7  ;;  %s579_s15 = scalar_lea.vmem [#allocation5], %s2275_s27 }
  0xe9   : > { %s587_s23 = sshll.u32 %s579_s15, 4  ;;  %s3957_s18 = sld [smem:[#allocation35_spill]]  ;;  %s588_s23 = int_to_ptr.vmem [resolvable:$true] %s587_s23 }
  0xea   : > { %s576_s1 = scalar_lea.sflag [#allocation6], %s3462_s21  ;;  %p3958_p8 = scmp.ne.s32.totalorder %s3951_s10, 0 }
  0xef   : > { %s3594_s17 = scalar_lea.hbm %s3957_s18, %s2276_s16  ;;  %s3033_s19 = scalar_lea.hbm %s3957_s18, 256 }
  0xf0   : > { %s3028_s3 = scalar_lea.hbm %s3594_s17, 128  ;;  %p3034_p6 = scmp.lt.u32.totalorder %s3594_s17, %s3957_s18 }
  0xf1   : > { %p3029_p12 = scmp.ne.s32.totalorder %s3594_s17, %s3028_s3  ;;  %p3035_p1 = scmp.lt.u32.totalorder %s3033_s19, %s3028_s3 }
  0xf2   : > { %p3037_p9 = scmp.lt.u32.totalorder %s3028_s3, %s3594_s17 }
  0xf3   : > { %p3031_p11 = pnand %p3029_p12, %p3958_p8  ;;  %p3036_p0 = por %p3035_p1, %p3034_p6 }
  0xf5   : > { %p3032_p5 = pneg %p3031_p11  ;;  %p3038_p10 = por %p3037_p9, %p3036_p0 }
  0xf7   : > { %p3039_p3 = pnand %p3038_p10, %p3032_p5 }
  0xf9   : > { %3042 = shalt.err (!%p3039_p3)
}
  0xfa   : > { %s3043_s29 = scalar_lea.vmem %s588_s23, 128  ;;  %s3199_s22 = smov [#allocation5]  }
  0xfb   : > { %p3044_p13 = scmp.ne.s32.totalorder %s588_s23, %s3043_s29  ;;  %s3048_s16 = sshll.u32 %s3199_s22, 4  ;;  %s3049_s16 = int_to_ptr.vmem [resolvable:$false] %s3048_s16 }
  0xfc   : > { %s3050_s15 = scalar_lea.vmem %s3049_s16, 256  ;;  %p3051_p2 = scmp.lt.s32.totalorder %s588_s23, %s3049_s16 }
  0xfd   : > { %p3046_p4 = pnand %p3044_p13, %p3958_p8  ;;  %p3052_p12 = scmp.lt.s32.totalorder %s3050_s15, %s3043_s29 }
  0xff   : > { %p3047_p7 = pneg %p3046_p4  ;;  %p3053_p11 = por %p3052_p12, %p3051_p2 }
 0x101   : > { %p3054_p1 = pnand %p3053_p11, %p3047_p7 }
 0x103   : > { %3057 = shalt.err (!%p3054_p1)
}
 0x104   : > { %p3959_p6 = scmp.ne.s32.totalorder %s3949_s4, 0  ;;  %s3960_s8 = sshll.u32 %s3462_s21, 2 }
 0x105   : > { %s616_s7 = scalar_lea.vmem [#allocation10], %s3960_s8  ;;  %s3058_s24 = scalar_lea.hbm %s3517_s14, 64 }
 0x106   : > { %2643 = dma.hbm_to_vmem [thread:$0]  (!%p3959_p6), %s3594_s17, 128, %s588_s23, %s576_s1  }
 0x107   : > { %s624_s3 = sshll.u32 %s616_s7, 4  ;;  %p3059_p5 = scmp.ne.s32.totalorder %s3517_s14, %s3058_s24  ;;  %s625_s3 = int_to_ptr.vmem [resolvable:$true] %s624_s3 }
 0x108   : > { %s3063_s27 = scalar_lea.hbm %s3872_s2, 128  ;;  %p3064_p10 = scmp.lt.u32.totalorder %s3517_s14, %s3872_s2 }
 0x109   : > { %p3061_p0 = pnand %p3059_p5, %p3958_p8  ;;  %p3065_p3 = scmp.lt.u32.totalorder %s3063_s27, %s3058_s24 }
 0x10a   : > { %p3067_p4 = scmp.lt.u32.totalorder %s3058_s24, %s3517_s14 }
 0x10b   : > { %p3062_p9 = pneg %p3061_p0  ;;  %p3066_p13 = por %p3065_p3, %p3064_p10 }
 0x10d   : > { %p3068_p7 = por %p3067_p4, %p3066_p13 }
 0x10f   : > { %p3069_p2 = pnand %p3068_p7, %p3062_p9 }
 0x111   : > { %3072 = shalt.err (!%p3069_p2)
}
 0x112   : > { %s3073_s21 = scalar_lea.vmem %s625_s3, 64  ;;  %s3200_s23 = smov [#allocation10]  }
 0x113   : > { %p3074_p12 = scmp.ne.s32.totalorder %s625_s3, %s3073_s21  ;;  %s3078_s17 = sshll.u32 %s3200_s23, 4  ;;  %s3079_s17 = int_to_ptr.vmem [resolvable:$false] %s3078_s17 }
 0x114   : > { %s3080_s1 = scalar_lea.vmem %s3079_s17, 128  ;;  %p3081_p5 = scmp.lt.s32.totalorder %s625_s3, %s3079_s17 }
 0x115   : > { %p3076_p11 = pnand %p3074_p12, %p3958_p8  ;;  %p3082_p0 = scmp.lt.s32.totalorder %s3080_s1, %s3073_s21 }
 0x117   : > { %p3077_p1 = pneg %p3076_p11  ;;  %p3083_p6 = por %p3082_p0, %p3081_p5 }
 0x119   : > { %p3084_p3 = pnand %p3083_p6, %p3077_p1 }
 0x11b   : > { %3087 = shalt.err (!%p3084_p3)
}
 0x11c   : > { %p3961_p10 = scmp.ne.s32.totalorder %s3949_s4, 0  ;;  %p3962_p9 = scmp.ne.s32.totalorder %s3935_s30, 0 }
 0x11d   : > { %s3637_s10 = sand.u32 (!%p3962_p9), 1, %s3170_s25   ;;  %p3963_p8 = scmp.ne.s32.totalorder (!%p3962_p9), %s3943_s20, 0 }
 0x11e   : > { %2649 = dma.hbm_to_vmem [thread:$0]  (!%p3961_p10), %s3517_s14, 64, %s625_s3, %s3482_s11  }
 0x11f   : > { %633 = sbr.rel (%p3962_p9) target bundleno = 4363 (0x110b), region = 88  ;;  %s2282_s22 = sshll.u32 (!%p3962_p9), %s3637_s10, 3 }
 0x120   : > { %s636_s16 = scalar_lea.sflag (!%p3962_p9), [#allocation6], %s3637_s10  ;;  %s3643_s15 = scalar_lea.vmem (!%p3962_p9), [#allocation5], %s2282_s22 }
 0x126   : > { %3141 = dma.done.wait (%p3963_p8), %s636_s16, 128  }
 0x127   : > { %3143 = vsyncadd (%p3963_p8), %s636_s16, 4294967168  ;;  %s644_s11 = sand.u32 1, %s3329_s0   ;;  %s2283_s30 = sshll.u32 %s3637_s10, 2 }
 0x128   : > { %s645_s4 = scalar_lea.sflag [#allocation9], %s644_s11  ;;  %s3651_s14 = scalar_lea.vmem [#allocation8], %s2283_s30 }
 0x129   : > { %3145 = dma.done.wait (%p3963_p8), %s645_s4, 128  }
 0x12a   : > { %3147 = vsyncadd (%p3963_p8), %s645_s4, 4294967168  ;;  %s3657_s8 = scalar_lea.vmem [#allocation10], %s2283_s30  ;;  %p3964_p6 = scmp.eq.s32.totalorder %s3329_s0, 0 }
 0x12c   : > { %3149 = dma.done.wait (%p3964_p6), [#allocation12], 2048   ;;  %p3965_p13 = pmov %p3964_p6 }
 0x12d   : > { %p3966_p4 = pmov %p3964_p6 }
 0x12e   : > { %3151 = vsyncadd (%p3965_p13), [#allocation12], 4294965248 }
 0x12f   : > { %3153 = dma.done.wait (%p3966_p4), [#allocation15], 2048   ;;  %p3967_p7 = pmov %p3966_p4 }
 0x130   : > { %p3968_p2 = pmov %p3966_p4 }
 0x131   : > { %3155 = vsyncadd (%p3967_p7), [#allocation15], 4294965248 }
 0x132   : > { %3157 = dma.done.wait (%p3968_p2), [#allocation18], 4096   ;;  %p3969_p12 = pmov %p3968_p2 }
 0x133   : > { %v3201_v0 = vmov 0.0   ;;  %vm3202_vm0 = vmmov 0   ;;  %v2732_v1 = vld [vmem:[#allocation13] sm:$0xff]   ;;  %v2733_v2 = vld [vmem:[#allocation13 + $0x8] sm:$0xff]   ;;  %v2734_v3 = vld [vmem:[#allocation13 + $0x10] sm:$0xff]   ;;  %vm1091_vm1 = vcmask 261120  }
 0x134   : > { %3159 = vsyncadd (%p3969_p12), [#allocation18], 4294963200  ;;  %2461 = vmatprep.subr.bf16.mxu0 %v3201_v0  ;;  %2477 = vmatprep.mubr.msk.bf16.mxu0 %vm3202_vm0, %v3201_v0  ;;  %v2735_v4 = vld [vmem:[#allocation13 + $0x18] sm:$0xff]   ;;  %v2736_v5 = vld [vmem:[#allocation13 + $0x20] sm:$0xff]   ;;  %s3203_s7 = smov 96   ;;  %s3970_s26 = sld [smem:[#allocation38_spill]] }
 0x135   : > { %2481 = vmatprep.subr.bf16.mxu1 %v3201_v0  ;;  %2497 = vmatprep.mubr.msk.bf16.mxu1 %vm3202_vm0, %v3201_v0  ;;  %v2748_v6 = vld [vmem:[#allocation14] sm:$0xff]   ;;  %v2737_v7 = vld [vmem:[#allocation13 + $0x28] sm:$0xff]   ;;  %v2738_v9 = vld [vmem:[#allocation13 + $0x30] sm:$0xff]   ;;  %s3971_s12 = sld [smem:[#allocation40_spill]]  ;;  %vm1155_vm2 = vcmask 1043456   ;;  %vm1138_vm3 = vcmask 64512  }
 0x136   : > { %2462 = vmatpush3.bf16.msra.mxu0 %v2732_v1  ;;  %2482 = vmatpush3.bf16.msra.mxu1 %v2748_v6  ;;  %v2749_v8 = vld [vmem:[#allocation14 + $0x8] sm:$0xff]   ;;  %v2750_v10 = vld [vmem:[#allocation14 + $0x10] sm:$0xff]   ;;  %v2739_v11 = vld [vmem:[#allocation13 + $0x38] sm:$0xff]   ;;  %vm1200_vm4 = vcmask 257024   ;;  %s3204_s29 = smov 64   ;;  %s3205_s21 = smov 32  }
 0x137   : > { %2463 = vmatprep.subr.bf16.mxu0 %v3201_v0  ;;  %2483 = vmatprep.subr.bf16.mxu1 %v3201_v0  ;;  %v2751_v12 = vld [vmem:[#allocation14 + $0x18] sm:$0xff]   ;;  %v748_v13 = vld [vmem:[%s3651_s14] sm:$0xf]  ;;  %v2740_v14 = vld [vmem:[#allocation11] sm:$0xff]   ;;  %vm1328_vm5 = vcmask 519424   ;;  %vm1455_vm6 = vcmask 781824  }
 0x138   : > { %v2752_v15 = vld [vmem:[#allocation14 + $0x20] sm:$0xff]   ;;  %v2741_v16 = vld [vmem:[#allocation11 + $0x8] sm:$0xff]   ;;  %v2742_v18 = vld [vmem:[#allocation11 + $0x10] sm:$0xff]   ;;  %vm1582_vm7 = vcmask 1044224   ;;  %s3972_s1 = sld [smem:[#allocation41_spill]]  ;;  %s3973_s11 = sld [smem:[#allocation45_spill]] }
 0x139   : > { %v2753_v17 = vld [vmem:[#allocation14 + $0x28] sm:$0xff]   ;;  %v2743_v19 = vld [vmem:[#allocation11 + $0x18] sm:$0xff]   ;;  %v2744_v20 = vld [vmem:[#allocation11 + $0x20] sm:$0xff]   ;;  %s3974_s14 = sld [smem:[#allocation46_spill]]  ;;  %s3975_s20 = sld [smem:[#allocation43_spill]] }
 0x13a   : > { %2464 = vmatpush3.bf16.msra.mxu0 %v2733_v2  ;;  %2484 = vmatpush3.bf16.msra.mxu1 %v2749_v8  ;;  %v2745_v21 = vld [vmem:[#allocation11 + $0x28] sm:$0xff]   ;;  %v2746_v22 = vld [vmem:[#allocation11 + $0x30] sm:$0xff]   ;;  %v2747_v23 = vld [vmem:[#allocation11 + $0x38] sm:$0xff]   ;;  %s3976_s24 = sld [smem:[#allocation44_spill]]  ;;  %s3978_s19 = sld [smem:[#allocation32_spill]] }
 0x13b   : > { %2465 = vmatprep.subr.bf16.mxu0 %v3201_v0  ;;  %2485 = vmatprep.subr.bf16.mxu1 %v3201_v0  ;;  %v3701_v24 = vld [vmem:[%s3643_s15] sm:$0xff]  ;;  %v2754_v26 = vld [vmem:[#allocation14 + $0x30] sm:$0xff]   ;;  %v2755_v27 = vld [vmem:[#allocation14 + $0x38] sm:$0xff]   ;;  %s3979_s17 = sld [smem:[#allocation47_spill]]  ;;  %s2070_s16 = scalar_lea.sflag [#allocation7], %s3637_s10 }
 0x13c   : > { %v977_v25 = vpack.c.bf16 %v3701_v24, %v3701_v24  ;;  %v2292_v28 = vld [vmem:[%s3876_s6] ss:$0 sm:$0xff]  ;;  %v975_v54 = vld [vmem:[%s3657_s8] sm:$0xf] }
 0x13d   : > { %v2310_v38 = vld [vmem:[%s3970_s26] ss:$0 sm:$0xff]  ;;  %v3736_v55 = vunpack.c.l.bf16 %v975_v54  ;;  %s3977_s26 = sld [smem:[#allocation29_spill]] }
 0x13e   : > { %2466 = vmatpush3.bf16.msra.mxu0 %v2734_v3  ;;  %2486 = vmatpush3.bf16.msra.mxu1 %v2750_v10  ;;  %v2301_v45 = vld [vmem:[%s3971_s12] ss:$0 sm:$0xff]  ;;  %s741_s12 = scalar_lea.vmem [#allocation20], %s2282_s22  ;;  %s3207_s22 = smov [#allocation20]  }
 0x13f   : > { %2467 = vmatprep.subr.bf16.mxu0 %v3201_v0  ;;  %2487 = vmatprep.subr.bf16.mxu1 %v3201_v0 }
 0x140   : > { %p3980_p1 = scmp.ne.s32.totalorder %s3978_s19, 0 }
 0x142   : > { %2468 = vmatpush3.bf16.msra.mxu0 %v2735_v4  ;;  %2488 = vmatpush3.bf16.msra.mxu1 %v2751_v12 }
 0x143   : > { %2469 = vmatprep.subr.bf16.mxu0 %v3201_v0  ;;  %2489 = vmatprep.subr.bf16.mxu1 %v3201_v0  ;;  %s2381_s27 = sshll.u32 %s3977_s26, 7 }
 0x146   : > { %2470 = vmatpush3.bf16.msra.mxu0 %v2736_v5  ;;  %2490 = vmatpush3.bf16.msra.mxu1 %v2752_v15 }
 0x147   : > { %2471 = vmatprep.subr.bf16.mxu0 %v3201_v0  ;;  %2491 = vmatprep.subr.bf16.mxu1 %v3201_v0 }
 0x14a   : > { %2472 = vmatpush3.bf16.msra.mxu0 %v2737_v7  ;;  %2492 = vmatpush3.bf16.msra.mxu1 %v2753_v17 }
 0x14b   : > { %2473 = vmatprep.subr.bf16.mxu0 %v3201_v0  ;;  %2493 = vmatprep.subr.bf16.mxu1 %v3201_v0 }
 0x14e   : > { %2474 = vmatpush3.bf16.msra.mxu0 %v2738_v9  ;;  %2494 = vmatpush3.bf16.msra.mxu1 %v2754_v26 }
 0x14f   : > { %2475 = vmatprep.subr.bf16.mxu0 %v3201_v0  ;;  %2495 = vmatprep.subr.bf16.mxu1 %v3201_v0 }
 0x152   : > { %2476 = vmatpush3.bf16.msra.mxu0 %v2739_v11  ;;  %2496 = vmatpush3.bf16.msra.mxu1 %v2755_v27 }
 0x153   : > { %2501 = vmatprep.subr.bf16.mxu0 %v3201_v0  ;;  %2521 = vmatprep.subr.bf16.mxu1 %v3201_v0 }
 0x155   : > { %2478 = vmatmul.mubr.bf16.vlgmr.msra.gmra.mrb[0].mxu0 %v748_v13  ;;  %2498 = vmatmul.mubr.bf16.vlgmr.msra.gmra.mrb[0].mxu1 %v748_v13 }
 0x156   : > { %2502 = vmatpush3.bf16.msra.mxu0 %v2740_v14  ;;  %2517 = vmatprep.mubr.msk.bf16.mxu0 %vm3202_vm0, %v3201_v0 }
 0x157   : > { %2503 = vmatprep.subr.bf16.mxu0 %v3201_v0  ;;  %2523 = vmatprep.mubr.msk.bf16.mxu1 %vm3202_vm0, %v3201_v0 }
 0x15a   : > { %2504 = vmatpush3.bf16.msra.mxu0 %v2741_v16 }
 0x15b   : > { %2505 = vmatprep.subr.bf16.mxu0 %v3201_v0 }
 0x15e   : > { %2506 = vmatpush3.bf16.msra.mxu0 %v2742_v18 }
 0x15f   : > { %2507 = vmatprep.subr.bf16.mxu0 %v3201_v0 }
 0x162   : > { %2508 = vmatpush3.bf16.msra.mxu0 %v2743_v19 }
 0x163   : > { %2509 = vmatprep.subr.bf16.mxu0 %v3201_v0 }
 0x166   : > { %2510 = vmatpush3.bf16.msra.mxu0 %v2744_v20 }
 0x167   : > { %2511 = vmatprep.subr.bf16.mxu0 %v3201_v0 }
 0x16a   : > { %2512 = vmatpush3.bf16.msra.mxu0 %v2745_v21 }
 0x16b   : > { %2513 = vmatprep.subr.bf16.mxu0 %v3201_v0 }
 0x16e   : > { %2514 = vmatpush3.bf16.msra.mxu0 %v2746_v22 }
 0x16f   : > { %2515 = vmatprep.subr.bf16.mxu0 %v3201_v0 }
 0x172   : > { %2516 = vmatpush3.bf16.msra.mxu0 %v2747_v23 }
 0x173   : > { %2569 = vmatprep.subr.bf16.mxu0 %v3201_v0 }
 0x175   : > { %2518 = vmatmul.mubr.bf16.vlgmr.msra.gmra.mrb[4].mxu0 %v977_v25 }
 0x176   : > { %2585 = vmatprep.mubr.msk.bf16.mxu0 %vm3202_vm0, %v3201_v0 }
 0x228   : > { %v854_v29 = vpop.f32.mrb[0].mxu0  ;;  %v967_v46 = vpop.f32.mrb[0].mxu1 }
 0x229   : > { %v855_v30 = vadd.f32 %v2292_v28, %v854_v29  ;;  %v2479_v31 = vpop.f32.mrb[1].mxu0  ;;  %v968_v47 = vadd.f32 %v2301_v45, %v967_v46  ;;  %v2499_v48 = vpop.f32.mrb[1].mxu1 }
 0x22a   : > { %v857_v32 = vpop.f32.mrb[2].mxu0  ;;  %v970_v49 = vpop.f32.mrb[2].mxu1 }
 0x22b   : > { %v860_v33 = vpack.c.bf16 %v855_v30, %v855_v30  ;;  %v2480_v34 = vpop.f32.mrb[3].mxu0  ;;  %v973_v50 = vpack.c.bf16 %v968_v47, %v968_v47  ;;  %v2500_v51 = vpop.f32.mrb[3].mxu1 }
 0x22d   : > { %861 = vst [vmem:[#allocation2] sm:$0xf] %v860_v33  ;;  %974 = vst [vmem:[#allocation3] sm:$0xf] %v973_v50 }
 0x234   : > { %v1090_v35 = vld [vmem:[#allocation2] sm:$0xf]  ;;  %v1151_v52 = vld [vmem:[#allocation3] sm:$0xf] }
 0x235   : > { %v2756_v36 = vld [vmem:[#allocation2] ss:$0 sps:$4 sm:$0xff]   ;;  %v1096_v37 = vsel %vm1091_vm1, %v1090_v35, 0  ;;  %v1157_v53 = vsel %vm1155_vm2, %v1151_v52, 0  ;;  %v2757_v22 = vld [vmem:[#allocation3] ss:$0 sps:$4 sm:$0xff]  }
 0x236   : > { %2522 = vmatpush3.bf16.xpose.msra.mxu1 %v1096_v37  ;;  %1209 = vrot.lane.b32.xlu1 %v2756_v36, %s3203_s7  ;;  %v2758_v23 = vld [vmem:[#allocation2] ss:$0 sps:$4 sm:$0xff]   ;;  %v2759_v32 = vld [vmem:[#allocation3] ss:$0 sps:$4 sm:$0xff]  }
 0x237   : > { %2527 = vmatprep.subr.bf16.mxu1 %v3201_v0 }
 0x248   : > { %v1083_v39 = vpop.f32.mrb[4].mxu0 }
 0x249   : > { %v1084_v40 = vadd.f32 %v2310_v38, %v1083_v39  ;;  %v2519_v41 = vpop.f32.mrb[5].mxu0 }
 0x24a   : > { %v1086_v42 = vpop.f32.mrb[6].mxu0 }
 0x24b   : > { %v3722_v43 = vpack.c.bf16 %v1084_v40, %v1084_v40  ;;  %v2520_v44 = vpop.f32.mrb[7].mxu0 }
 0x24d   : > { %1204 = vrot.lane.b32.xlu1 %v3722_v43, %s3203_s7  ;;  %2524 = vmatmul.mubr.msk.bf16.vlgmr.msra.gmra.mrb[4].mxu1 %vm1091_vm1, %v3722_v43 }
 0x24e   : > { %2529 = vmatprep.mubr.msk.bf16.mxu1 %vm3202_vm0, %v3201_v0  ;;  %2528 = vmatpush3.bf16.msra.mxu1 %v1157_v53 }
 0x24f   : > { %2533 = vmatprep.subr.bf16.mxu1 %v3201_v0 }
 0x2a8   : > { %v1210_v7 = vpop.permute.xlu1 %1209 }
 0x2a9   : > { %v1215_v9 = vsel %vm1091_vm1, %v1210_v7, 0 }
 0x2bf   : > { %v1205_v10 = vpop.permute.xlu1 %1204 }
 0x320   : > { %v1132_v56 = vpop.f32.mrb[4].mxu1 }
 0x321   : > { %v1133_v57 = vadd.f32 %v1132_v56, %v3736_v55  ;;  %v2525_v58 = vpop.f32.mrb[5].mxu1 }
 0x322   : > { %v1135_v59 = vpop.f32.mrb[6].mxu1 }
 0x323   : > { %v2526_v60 = vpop.f32.mrb[7].mxu1  ;;  %v1139_v61 = vsel %vm1138_vm3, %v1133_v57, -inf  ;;  %v2760_v59 = vld [vmem:[#allocation2] ss:$0 sps:$4 sm:$0xff]  }
 0x324   : > { %1140 = vmax.xlane.f32.xlu0 %v1139_v61 }
 0x3b1   : > { %v1141_v62 = vpop.xlane.xlu0 %1140 }
 0x3b2   : > { %v1142_v63 = vsub.f32 %v1133_v57, %v1141_v62 }
 0x3b4   : > { %v1143_v1 = vmul.f32 1.442695, %v1142_v63 }
 0x3b6   : > { %2810 = vpow2.f32 %v1143_v1 }
 0x3c0   : > { %v2811_v2 = vpop.eup %2810 }
 0x3c1   : > { %v1145_v3 = vsel %vm1138_vm3, %v2811_v2, 0.0 }
 0x3c2   : > { %1146 = vadd.xlane.f32.xlu0 %v1145_v3 }
 0x44f   : > { %v1147_v4 = vpop.xlane.xlu0 %1146 }
 0x450   : > { %2812 = vrcp.f32 %v1147_v4 }
 0x45a   : > { %v2813_v5 = vpop.eup %2812 }
 0x45b   : > { %v1149_v6 = vmul.f32 %v2813_v5, %v2811_v2 }
 0x45d   : > { %v1150_v8 = vpack.c.bf16 %v1149_v6, %v1149_v6 }
 0x45f   : > { %2530 = vmatmul.mubr.msk.bf16.vlgmr.msra.gmra.mrb[8].mxu1 %vm1138_vm3, %v1150_v8 }
 0x460   : > { %2534 = vmatpush3.bf16.xpose.msra.mxu1 %v1215_v9  ;;  %2535 = vmatprep.mubr.msk.bf16.mxu1 %vm3202_vm0, %v3201_v0 }
 0x461   : > { %2539 = vmatprep.subr.bf16.mxu1 %v3201_v0 }
 0x467   : > { %2536 = vmatmul.mubr.msk.bf16.vlgmr.msra.gmra.mrb[12].mxu1 %vm1091_vm1, %v1205_v10 }
 0x468   : > { %2541 = vmatprep.mubr.msk.bf16.mxu1 %vm3202_vm0, %v3201_v0 }
 0x532   : > { %v1193_v11 = vpop.f32.mrb[8].mxu1 }
 0x533   : > { %v1199_v12 = vpack.c.bf16 %v1193_v11, %v1193_v11  ;;  %v2531_v13 = vpop.f32.mrb[9].mxu1 }
 0x534   : > { %v1196_v14 = vpop.f32.mrb[10].mxu1  ;;  %v2761_v13 = vld [vmem:[#allocation3] ss:$0 sps:$4 sm:$0xff]  }
 0x535   : > { %1201 = vst.msk [vmem:[#allocation4] sm:$0xf] %vm1200_vm4, %v1199_v12  ;;  %v2532_v15 = vpop.f32.mrb[11].mxu1 }
 0x53a   : > { %v1251_v16 = vpop.f32.mrb[12].mxu1 }
 0x53b   : > { %v1252_v17 = vadd.f32 %v1251_v16, %v3736_v55  ;;  %v2537_v18 = vpop.f32.mrb[13].mxu1 }
 0x53c   : > { %v1254_v19 = vpop.f32.mrb[14].mxu1 }
 0x53d   : > { %v2538_v20 = vpop.f32.mrb[15].mxu1  ;;  %v1257_v21 = vsel %vm1138_vm3, %v1252_v17, -inf }
 0x53e   : > { %1258 = vmax.xlane.f32.xlu0 %v1257_v21 }
 0x554   : > { %1273 = vrot.lane.b32.xlu0 %v2757_v22, %s3203_s7 }
 0x558   : > { %1336 = vrot.lane.b32.xlu0 %v2758_v23, %s3204_s29 }
 0x55c   : > { %1331 = vrot.lane.b32.xlu0 %v3722_v43, %s3204_s29 }
 0x5cb   : > { %v1259_v25 = vpop.xlane.xlu0 %1258 }
 0x5cc   : > { %v1260_v26 = vsub.f32 %v1252_v17, %v1259_v25 }
 0x5ce   : > { %v1261_v27 = vmul.f32 1.442695, %v1260_v26 }
 0x5cf   : > { %v1274_v28 = vpop.permute.xlu0 %1273 }
 0x5d0   : > { %2814 = vpow2.f32 %v1261_v27  ;;  %v1279_v29 = vsel %vm1155_vm2, %v1274_v28, 0 }
 0x5d1   : > { %2540 = vmatpush3.bf16.msra.mxu1 %v1279_v29  ;;  %v2762_v29 = vld [vmem:[#allocation16] sm:$0xff]  }
 0x5d2   : > { %2545 = vmatprep.subr.bf16.mxu1 %v3201_v0  ;;  %2570 = vmatpush3.bf16.msra.mxu0 %v2762_v29 }
 0x5d3   : > { %v1337_v36 = vpop.permute.xlu0 %1336  ;;  %2571 = vmatprep.subr.bf16.mxu0 %v3201_v0 }
 0x5d4   : > { %v1342_v38 = vsel %vm1091_vm1, %v1337_v36, 0  ;;  %v2769_v36 = vld [vmem:[#allocation16 + $0x38] sm:$0xff]  }
 0x5d7   : > { %v1332_v40 = vpop.permute.xlu0 %1331 }
 0x5da   : > { %v2815_v30 = vpop.eup %2814 }
 0x5db   : > { %v1263_v31 = vsel %vm1138_vm3, %v2815_v30, 0.0 }
 0x5dc   : > { %1264 = vadd.xlane.f32.xlu1 %v1263_v31  ;;  %v2764_v31 = vld [vmem:[#allocation16 + $0x10] sm:$0xff]  }
 0x5ed   : > { %1400 = vrot.lane.b32.xlu1 %v2759_v32, %s3204_s29  ;;  %v2765_v32 = vld [vmem:[#allocation16 + $0x18] sm:$0xff]  }
 0x669   : > { %v1265_v33 = vpop.xlane.xlu1 %1264 }
 0x66a   : > { %2816 = vrcp.f32 %v1265_v33  ;;  %v2766_v33 = vld [vmem:[#allocation16 + $0x20] sm:$0xff]  }
 0x66d   : > { %v1401_v39 = vpop.permute.xlu1 %1400 }
 0x66e   : > { %v1406_v41 = vsel %vm1155_vm2, %v1401_v39, 0 }
 0x674   : > { %v2817_v34 = vpop.eup %2816 }
 0x675   : > { %v1267_v35 = vmul.f32 %v2817_v34, %v2815_v30  ;;  %v2763_v30 = vld [vmem:[#allocation16 + $0x8] sm:$0xff]  }
 0x676   : > { %2572 = vmatpush3.bf16.msra.mxu0 %v2763_v30  ;;  %v2767_v34 = vld [vmem:[#allocation16 + $0x28] sm:$0xff]  }
 0x677   : > { %v1268_v37 = vpack.c.bf16 %v1267_v35, %v1267_v35  ;;  %2573 = vmatprep.subr.bf16.mxu0 %v3201_v0  ;;  %v2768_v35 = vld [vmem:[#allocation16 + $0x30] sm:$0xff]  }
 0x679   : > { %2542 = vmatmul.mubr.msk.bf16.vlgmr.msra.gmra.mrb[16].mxu1 %vm1138_vm3, %v1268_v37 }
 0x67a   : > { %2546 = vmatpush3.bf16.xpose.msra.mxu1 %v1342_v38  ;;  %2547 = vmatprep.mubr.msk.bf16.mxu1 %vm3202_vm0, %v3201_v0 }
 0x67b   : > { %2551 = vmatprep.subr.bf16.mxu1 %v3201_v0  ;;  %2574 = vmatpush3.bf16.msra.mxu0 %v2764_v31  ;;  %v2806_v31 = vld [vmem:[#allocation19 + $0x70] sm:$0xff]  }
 0x67c   : > { %2575 = vmatprep.subr.bf16.mxu0 %v3201_v0 }
 0x67f   : > { %2576 = vmatpush3.bf16.msra.mxu0 %v2765_v32  ;;  %v2807_v32 = vld [vmem:[#allocation19 + $0x30] sm:$0xff]  }
 0x680   : > { %2577 = vmatprep.subr.bf16.mxu0 %v3201_v0 }
 0x681   : > { %2548 = vmatmul.mubr.msk.bf16.vlgmr.msra.gmra.mrb[20].mxu1 %vm1091_vm1, %v1332_v40 }
 0x682   : > { %2552 = vmatpush3.bf16.msra.mxu1 %v1406_v41  ;;  %2553 = vmatprep.mubr.msk.bf16.mxu1 %vm3202_vm0, %v3201_v0 }
 0x683   : > { %2557 = vmatprep.subr.bf16.mxu1 %v3201_v0  ;;  %2578 = vmatpush3.bf16.msra.mxu0 %v2766_v33  ;;  %v2808_v33 = vld [vmem:[#allocation19 + $0x78] sm:$0xff]  }
 0x684   : > { %2579 = vmatprep.subr.bf16.mxu0 %v3201_v0 }
 0x687   : > { %2580 = vmatpush3.bf16.msra.mxu0 %v2767_v34  ;;  %v2809_v34 = vld [vmem:[#allocation19 + $0x38] sm:$0xff]  }
 0x688   : > { %2581 = vmatprep.subr.bf16.mxu0 %v3201_v0 }
 0x68b   : > { %2582 = vmatpush3.bf16.msra.mxu0 %v2768_v35  ;;  %v1744_v35 = vlaneseq }
 0x68c   : > { %2583 = vmatprep.subr.bf16.mxu0 %v3201_v0 }
 0x68f   : > { %2584 = vmatpush3.bf16.msra.mxu0 %v2769_v36  ;;  %v1745_v36 = vshrl.u32 %v1744_v35, 7 }
 0x74c   : > { %v1315_v42 = vpop.f32.mrb[16].mxu1 }
 0x74d   : > { %v2543_v44 = vpop.f32.mrb[17].mxu1  ;;  %v2384_v14 = vpack.c.bf16 %v1315_v42, %v1315_v42 }
 0x74e   : > { %v1318_v45 = vpop.f32.mrb[18].mxu1 }
 0x74f   : > { %v2544_v46 = vpop.f32.mrb[19].mxu1  ;;  %v2336_v45 = vld [vmem:[%s3972_s1] ss:$0 sm:$0xff]  ;;  %s3821_s1 = scalar_lea.hbm %s3979_s17, %s2381_s27 }
 0x754   : > { %v1378_v47 = vpop.f32.mrb[20].mxu1 }
 0x755   : > { %v1379_v48 = vadd.f32 %v1378_v47, %v3736_v55  ;;  %v2549_v49 = vpop.f32.mrb[21].mxu1 }
 0x756   : > { %v1381_v50 = vpop.f32.mrb[22].mxu1 }
 0x757   : > { %v2550_v51 = vpop.f32.mrb[23].mxu1  ;;  %v1384_v52 = vsel %vm1138_vm3, %v1379_v48, -inf  ;;  %v2770_v50 = vld [vmem:[#allocation17] ss:$8 sps:$4 sm:$0xff]  }
 0x758   : > { %1385 = vmax.xlane.f32.xlu0 %v1384_v52  ;;  %v2772_v51 = vld [vmem:[#allocation17 + $0x4] ss:$8 sps:$4 sm:$0xff]   ;;  %v2775_v52 = vld [vmem:[#allocation17 + $0x14] ss:$8 sps:$4 sm:$0xff]  }
 0x7e5   : > { %v1386_v53 = vpop.xlane.xlu0 %1385 }
 0x7e6   : > { %v1387_v54 = vsub.f32 %v1379_v48, %v1386_v53  ;;  %v2773_v53 = vld [vmem:[#allocation17 + $0x10] ss:$8 sps:$4 sm:$0xff]  }
 0x7e8   : > { %v1388_v56 = vmul.f32 1.442695, %v1387_v54 }
 0x7ea   : > { %2818 = vpow2.f32 %v1388_v56 }
 0x7f4   : > { %v2819_v57 = vpop.eup %2818 }
 0x7f5   : > { %v1390_v58 = vsel %vm1138_vm3, %v2819_v57, 0.0 }
 0x7f6   : > { %1391 = vadd.xlane.f32.xlu1 %v1390_v58 }
 0x807   : > { %1463 = vrot.lane.b32.xlu1 %v2760_v59, %s3205_s21  ;;  %v2778_v59 = vld [vmem:[#allocation17 + $0x24] ss:$8 sps:$4 sm:$0xff]  }
 0x80b   : > { %1458 = vrot.lane.b32.xlu1 %v3722_v43, %s3205_s21 }
 0x883   : > { %v1392_v60 = vpop.xlane.xlu1 %1391 }
 0x884   : > { %2820 = vrcp.f32 %v1392_v60  ;;  %v2776_v60 = vld [vmem:[#allocation17 + $0x20] ss:$8 sps:$4 sm:$0xff]  }
 0x887   : > { %v1464_v63 = vpop.permute.xlu1 %1463 }
 0x888   : > { %v1469_v2 = vsel %vm1091_vm1, %v1464_v63, 0  ;;  %v2784_v63 = vld [vmem:[#allocation17 + $0x44] ss:$8 sps:$4 sm:$0xff]  }
 0x88b   : > { %v1459_v3 = vpop.permute.xlu1 %1458 }
 0x88e   : > { %v2821_v61 = vpop.eup %2820 }
 0x88f   : > { %v1394_v62 = vmul.f32 %v2821_v61, %v2819_v57  ;;  %v2781_v61 = vld [vmem:[#allocation17 + $0x34] ss:$8 sps:$4 sm:$0xff]  }
 0x891   : > { %v1395_v1 = vpack.c.bf16 %v1394_v62, %v1394_v62  ;;  %v2779_v62 = vld [vmem:[#allocation17 + $0x30] ss:$8 sps:$4 sm:$0xff]  }
 0x893   : > { %2554 = vmatmul.mubr.msk.bf16.vlgmr.msra.gmra.mrb[24].mxu1 %vm1138_vm3, %v1395_v1  ;;  %v2782_v1 = vld [vmem:[#allocation17 + $0x40] ss:$8 sps:$4 sm:$0xff]  }
 0x894   : > { %2558 = vmatpush3.bf16.xpose.msra.mxu1 %v1469_v2  ;;  %2559 = vmatprep.mubr.msk.bf16.mxu1 %vm3202_vm0, %v3201_v0  ;;  %v2787_v2 = vld [vmem:[#allocation17 + $0x54] ss:$8 sps:$4 sm:$0xff]  }
 0x895   : > { %2563 = vmatprep.subr.bf16.mxu1 %v3201_v0 }
 0x89b   : > { %2560 = vmatmul.mubr.msk.bf16.vlgmr.msra.gmra.mrb[28].mxu1 %vm1091_vm1, %v1459_v3  ;;  %v2785_v3 = vld [vmem:[#allocation17 + $0x50] ss:$8 sps:$4 sm:$0xff]  }
 0x89c   : > { %2565 = vmatprep.mubr.msk.bf16.mxu1 %vm3202_vm0, %v3201_v0 }
 0x966   : > { %v1442_v43 = vpop.f32.mrb[24].mxu1 }
 0x967   : > { %v2555_v4 = vpop.f32.mrb[25].mxu1  ;;  %v2385_v15 = vpack.c.bf16 %v1442_v43, %v1442_v43  ;;  %v2788_v43 = vld [vmem:[#allocation17 + $0x60] ss:$8 sps:$4 sm:$0xff]  }
 0x968   : > { %v1445_v5 = vpop.f32.mrb[26].mxu1  ;;  %v2790_v4 = vld [vmem:[#allocation17 + $0x64] ss:$8 sps:$4 sm:$0xff]  }
 0x969   : > { %v2556_v6 = vpop.f32.mrb[27].mxu1  ;;  %v2793_v5 = vld [vmem:[#allocation17 + $0x74] ss:$8 sps:$4 sm:$0xff]  }
 0x96a   : > { %v3206_v6 = vmov 0  }
 0x96e   : > { %v1505_v7 = vpop.f32.mrb[28].mxu1 }
 0x96f   : > { %v1506_v8 = vadd.f32 %v1505_v7, %v3736_v55  ;;  %v2561_v9 = vpop.f32.mrb[29].mxu1  ;;  %v2791_v7 = vld [vmem:[#allocation17 + $0x70] ss:$8 sps:$4 sm:$0xff]  }
 0x970   : > { %v1508_v10 = vpop.f32.mrb[30].mxu1  ;;  %v2795_v9 = vld [vmem:[#allocation19] sm:$0xff]  }
 0x971   : > { %v2562_v11 = vpop.f32.mrb[31].mxu1  ;;  %v1511_v12 = vsel %vm1138_vm3, %v1506_v8, -inf  ;;  %v2796_v10 = vld [vmem:[#allocation19 + $0x48] sm:$0xff]  }
 0x972   : > { %1512 = vmax.xlane.f32.xlu0 %v1511_v12  ;;  %v2797_v11 = vld [vmem:[#allocation19 + $0x8] sm:$0xff]   ;;  %v2798_v12 = vld [vmem:[#allocation19 + $0x50] sm:$0xff]  }
 0x988   : > { %1527 = vrot.lane.b32.xlu0 %v2761_v13, %s3205_s21  ;;  %v2799_v13 = vld [vmem:[#allocation19 + $0x10] sm:$0xff]  }
 0x98c   : > { %1325 = vrot.lane.b32.xlu0 %v2384_v14, %s3205_s21  ;;  %v2800_v14 = vld [vmem:[#allocation19 + $0x58] sm:$0xff]  }
 0x990   : > { %1452 = vrot.lane.b32.xlu0 %v2385_v15, %s3204_s29  ;;  %v2801_v15 = vld [vmem:[#allocation19 + $0x18] sm:$0xff]   ;;  %s2084_s29 = sshll.u32 %s741_s12, 4  ;;  %s3823_s29 = int_to_ptr.vmem [resolvable:$true] %s2084_s29 }
 0x991   : > { %s3088_s15 = scalar_lea.vmem %s3823_s29, 128 }
 0x992   : > { %p3089_p11 = scmp.ne.s32.totalorder %s3823_s29, %s3088_s15 }
 0x994   : > { %p3090_p5 = pnand %p3089_p11, %p3980_p1 }
 0x996   : > { %p3091_p0 = pneg %p3090_p5 }
 0x9ff   : > { %v1513_v16 = vpop.xlane.xlu0 %1512 }
 0xa00   : > { %v1514_v17 = vsub.f32 %v1506_v8, %v1513_v16  ;;  %v2794_v8 = vld [vmem:[#allocation19 + $0x40] sm:$0xff]  }
 0xa01   : > { %2439 = vmatprep.subr.bf16.mxu0 %v2794_v8  ;;  %v2802_v16 = vld [vmem:[#allocation19 + $0x60] sm:$0xff]  }
 0xa02   : > { %v1515_v18 = vmul.f32 1.442695, %v1514_v17  ;;  %v2803_v17 = vld [vmem:[#allocation19 + $0x20] sm:$0xff]  }
 0xa03   : > { %v1528_v19 = vpop.permute.xlu0 %1527 }
 0xa04   : > { %2822 = vpow2.f32 %v1515_v18  ;;  %v1533_v55 = vsel %vm1155_vm2, %v1528_v19, 0  ;;  %v2804_v18 = vld [vmem:[#allocation19 + $0x68] sm:$0xff]  }
 0xa05   : > { %2564 = vmatpush3.bf16.msra.mxu1 %v1533_v55  ;;  %v2805_v19 = vld [vmem:[#allocation19 + $0x28] sm:$0xff]  }
 0xa06   : > { %1834 = vmatprep.subr.bf16.mxu1 %v2772_v51 }
 0xa07   : > { %v1326_v20 = vpop.permute.xlu0 %1325 }
 0xa08   : > { %1329 = vst.msk [vmem:[#allocation4] sm:$0xf] %vm1328_vm5, %v1326_v20 }
 0xa0b   : > { %v1453_v21 = vpop.permute.xlu0 %1452 }
 0xa0c   : > { %1456 = vst.msk [vmem:[#allocation4] sm:$0xf] %vm1455_vm6, %v1453_v21 }
 0xa0e   : > { %v2823_v22 = vpop.eup %2822 }
 0xa0f   : > { %v1517_v23 = vsel %vm1138_vm3, %v2823_v22, 0.0 }
 0xa10   : > { %1518 = vadd.xlane.f32.xlu1 %v1517_v23  ;;  %v2345_v23 = vld [vmem:[%s3973_s11] ss:$0 sm:$0xff]  ;;  %s3092_s11 = sshll.u32 %s3207_s22, 4  ;;  %s3093_s11 = int_to_ptr.vmem [resolvable:$false] %s3092_s11 }
 0xa11   : > { %s3094_s30 = scalar_lea.vmem %s3093_s11, 256  ;;  %p3095_p3 = scmp.lt.s32.totalorder %s3823_s29, %s3093_s11 }
 0xa12   : > { %p3096_p10 = scmp.lt.s32.totalorder %s3094_s30, %s3088_s15 }
 0xa14   : > { %p3097_p9 = por %p3096_p10, %p3095_p3 }
 0xa16   : > { %p3098_p8 = pnand %p3097_p9, %p3091_p0 }
 0xa9d   : > { %v1519_v25 = vpop.xlane.xlu1 %1518 }
 0xa9e   : > { %2824 = vrcp.f32 %v1519_v25 }
 0xaa8   : > { %v2825_v26 = vpop.eup %2824 }
 0xaa9   : > { %v1521_v27 = vmul.f32 %v2825_v26, %v2823_v22  ;;  %v2346_v26 = vld [vmem:[%s3974_s14] ss:$0 sm:$0xff] }
 0xaab   : > { %v1522_v28 = vpack.c.bf16 %v1521_v27, %v1521_v27 }
 0xaad   : > { %2566 = vmatmul.mubr.msk.bf16.vlgmr.msra.gmra.mrb[32].mxu1 %vm1138_vm3, %v1522_v28 }
 0xaae   : > { %1835 = vmatpush1.bf16.msra.mxu1 %v2770_v50  ;;  %1866 = vmatprep.mubr.bf16.mxu1 %v3206_v6 }
 0xaaf   : > { %1836 = vmatprep.subr.bf16.mxu1 %v2775_v52 }
 0xab2   : > { %1837 = vmatpush1.bf16.msra.mxu1 %v2773_v53  ;;  %v2363_v53 = vld [vmem:[%s3976_s24] ss:$0 sm:$0xff] }
 0xab3   : > { %1838 = vmatprep.subr.bf16.mxu1 %v2778_v59 }
 0xab6   : > { %1839 = vmatpush1.bf16.msra.mxu1 %v2776_v60 }
 0xab7   : > { %1840 = vmatprep.subr.bf16.mxu1 %v2781_v61 }
 0xaba   : > { %1841 = vmatpush1.bf16.msra.mxu1 %v2779_v62 }
 0xabb   : > { %1842 = vmatprep.subr.bf16.mxu1 %v2784_v63 }
 0xabe   : > { %1843 = vmatpush1.bf16.msra.mxu1 %v2782_v1 }
 0xabf   : > { %1844 = vmatprep.subr.bf16.mxu1 %v2787_v2 }
 0xac2   : > { %1845 = vmatpush1.bf16.msra.mxu1 %v2785_v3 }
 0xac3   : > { %1846 = vmatprep.subr.bf16.mxu1 %v2790_v4 }
 0xac6   : > { %1847 = vmatpush1.bf16.msra.mxu1 %v2788_v43 }
 0xac7   : > { %1848 = vmatprep.subr.bf16.mxu1 %v2793_v5 }
 0xaca   : > { %1849 = vmatpush1.bf16.msra.mxu1 %v2791_v7 }
 0xb80   : > { %v1569_v37 = vpop.f32.mrb[32].mxu1 }
 0xb81   : > { %v2386_v38 = vpack.c.bf16 %v1569_v37, %v1569_v37  ;;  %v2567_v39 = vpop.f32.mrb[33].mxu1  ;;  %v1746_v37 = vsub.s32 0, %v1745_v36 }
 0xb82   : > { %v1572_v40 = vpop.f32.mrb[34].mxu1  ;;  %v1750_v39 = vsub.s32 1, %v1745_v36 }
 0xb83   : > { %1579 = vrot.lane.b32.xlu0 %v2386_v38, %s3203_s7  ;;  %v2568_v41 = vpop.f32.mrb[35].mxu1  ;;  %v1742_v38 = vld [vmem:[%s3975_s20] sm:$0x3] }
 0xb84   : > { %v1747_v40 = vrot.slane %v1742_v38, %v1746_v37 }
 0xbf5   : > { %v1580_v42 = vpop.permute.xlu0 %1579 }
 0xbf6   : > { %1583 = vst.msk [vmem:[#allocation4] sm:$0xf] %vm1582_vm7, %v1580_v42 }
 0xbfd   : > { %v1584_v44 = vld [vmem:[#allocation4] sm:$0xf] }
 0xbfe   : > { %2586 = vmatmul.mubr.bf16.vlgmr.msra.gmra.mrb[8].mxu0 %v1584_v44 }
 0xbff   : > { %2440 = vmatpush3.bf16.msra.mxu0 %v2795_v9 }
 0xc00   : > { %2441 = vmatprep.subr.bf16.mxu0 %v2796_v10 }
 0xc03   : > { %2442 = vmatpush3.bf16.msra.mxu0 %v2797_v11 }
 0xc04   : > { %2443 = vmatprep.subr.bf16.mxu0 %v2798_v12 }
 0xc07   : > { %2444 = vmatpush3.bf16.msra.mxu0 %v2799_v13 }
 0xc08   : > { %2445 = vmatprep.subr.bf16.mxu0 %v2800_v14 }
 0xc0b   : > { %2446 = vmatpush3.bf16.msra.mxu0 %v2801_v15 }
 0xc0c   : > { %2447 = vmatprep.subr.bf16.mxu0 %v2802_v16 }
 0xc0f   : > { %2448 = vmatpush3.bf16.msra.mxu0 %v2803_v17 }
 0xc10   : > { %2449 = vmatprep.subr.bf16.mxu0 %v2804_v18 }
 0xc13   : > { %2450 = vmatpush3.bf16.msra.mxu0 %v2805_v19 }
 0xc14   : > { %2451 = vmatprep.subr.bf16.mxu0 %v2806_v31 }
 0xc17   : > { %2452 = vmatpush3.bf16.msra.mxu0 %v2807_v32 }
 0xc18   : > { %2453 = vmatprep.subr.bf16.mxu0 %v2808_v33 }
 0xc1b   : > { %2454 = vmatpush3.bf16.msra.mxu0 %v2809_v34 }
 0xcd1   : > { %v1690_v46 = vpop.f32.mrb[8].mxu0 }
 0xcd2   : > { %v1691_v47 = vadd.f32 %v2336_v45, %v1690_v46  ;;  %v2587_v0 = vpop.f32.mrb[9].mxu0 }
 0xcd3   : > { %v1693_v48 = vpop.f32.mrb[10].mxu0 }
 0xcd4   : > { %1698 = vadd.xlane.f32.xlu1 %v1691_v47  ;;  %v2588_v49 = vpop.f32.mrb[11].mxu0 }
 0xd61   : > { %v1699_v54 = vpop.xlane.xlu1 %1698 }
 0xd62   : > { %v1701_v56 = vmul.f32 0.0078125, %v1699_v54 }
 0xd64   : > { %v1702_v57 = vsub.f32 %v1691_v47, %v1701_v56 }
 0xd66   : > { %v1703_v58 = vmul.f32 %v1702_v57, %v1702_v57 }
 0xd68   : > { %1704 = vadd.xlane.f32.xlu0 %v1703_v58 }
 0xdf5   : > { %v1705_v55 = vpop.xlane.xlu0 %1704 }
 0xdf6   : > { %v1706_v20 = vmul.f32 0.0078125, %v1705_v55 }
 0xdf8   : > { %v1707_v21 = vadd.f32 1e-05, %v1706_v20 }
 0xdfa   : > { %2826 = vrsqrt.f32 %v1707_v21 }
 0xe04   : > { %v2827_v22 = vpop.eup %2826 }
 0xe05   : > { %v1709_v25 = vmul.f32 %v2827_v22, %v1702_v57 }
 0xe07   : > { %v1716_v27 = vmul.f32 %v2345_v23, %v1709_v25 }
 0xe09   : > { %v1723_v28 = vadd.f32 %v2346_v26, %v1716_v27 }
 0xe0b   : > { %v1724_v29 = vadd.f32 %v1723_v28, %v3701_v24  ;;  %v1751_v24 = vrot.slane %v1742_v38, %v1750_v39 }
 0xe0d   : > { %v1725_v30 = vpack.c.bf16 %v1724_v29, %v1724_v29 }
 0xe0f   : > { %1867 = vmatmul.mubr.bf16.vlgmr.msra.gmra.mrb[36].mxu1 %v1725_v30 }
 0xee2   : > { %v1868_v41 = vpop.f32.mrb[36].mxu1 }
 0xee3   : > { %v1869_v42 = vadd.f32 %v1868_v41, %v1747_v40  ;;  %v1870_v44 = vpop.f32.mrb[37].mxu1 }
 0xee4   : > { %v1871_v45 = vadd.f32 %v1870_v44, %v1751_v24  ;;  %v1872_v46 = vpop.f32.mrb[38].mxu1 }
 0xee5   : > { %v1875_v47 = vmax.f32 %v1869_v42, 0.0  ;;  %v1873_v0 = vpop.f32.mrb[39].mxu1 }
 0xee6   : > { %v1876_v48 = vmax.f32 %v1871_v45, 0.0 }
 0xee7   : > { %v1877_v50 = vpack.c.bf16 %v1875_v47, %v1875_v47 }
 0xee8   : > { %v1878_v49 = vpack.c.bf16 %v1876_v48, %v1876_v48 }
 0xeea   : > { %2046 = vmatprep.mubr.bf16.mxu0 %v1878_v49 }
 0xeeb   : > { %2047 = vmatmul.mubr.bf16.vlgmr.msra.gmra.mrb[12].mxu0 %v1877_v50 }
 0xfbe   : > { %v2455_v51 = vpop.f32.mrb[12].mxu0 }
 0xfbf   : > { %v2456_v52 = vpop.f32.mrb[13].mxu0 }
 0xfc0   : > { %v2457_v54 = vadd.f32 %v2456_v52, %v2455_v51  ;;  %v2458_v56 = vpop.f32.mrb[14].mxu0 }
 0xfc1   : > { %v2459_v57 = vpop.f32.mrb[15].mxu0 }
 0xfc2   : > { %v2049_v58 = vadd.f32 %v2457_v54, %v2363_v53 }
 0xfc4   : > { %2054 = vadd.xlane.f32.xlu1 %v2049_v58 }
0x1051   : > { %v2055_v59 = vpop.xlane.xlu1 %2054 }
0x1052   : > { %v2056_v60 = vmul.f32 0.0078125, %v2055_v59 }
0x1054   : > { %v2057_v61 = vsub.f32 %v2049_v58, %v2056_v60 }
0x1056   : > { %v2058_v62 = vmul.f32 %v2057_v61, %v2057_v61 }
0x1058   : > { %2059 = vadd.xlane.f32.xlu1 %v2058_v62 }
0x10e5   : > { %v2060_v63 = vpop.xlane.xlu1 %2059 }
0x10e6   : > { %v2061_v1 = vmul.f32 0.0078125, %v2060_v63 }
0x10e8   : > { %v2062_v2 = vadd.f32 1e-05, %v2061_v1 }
0x10ea   : > { %2828 = vrsqrt.f32 %v2062_v2 }
0x10f4   : > { %v2829_v3 = vpop.eup %2828 }
0x10f5   : > { %v2064_v43 = vmul.f32 %v2829_v3, %v2057_v61 }
0x10f7   : > { %v2065_v4 = vmul.f32 %v2345_v23, %v2064_v43 }
0x10f9   : > { %v2066_v5 = vadd.f32 %v2346_v26, %v2065_v4 }
0x10fb   : > { %v2067_v6 = vadd.f32 %v2066_v5, %v1724_v29 }
0x10fd   : > { %2068 = vst [vmem:[%s741_s12] sm:$0xff] %v2067_v6 }
0x10fe   : > { %3101 = shalt.err (!%p3098_p8)
}
0x10ff   : > { %s3102_s10 = scalar_lea.hbm %s3821_s1, 128  ;;  %s3106_s8 = scalar_lea.hbm %s3979_s17, 256 }
0x1100   : > { %p3103_p6 = scmp.ne.s32.totalorder %s3821_s1, %s3102_s10  ;;  %p3107_p7 = scmp.lt.u32.totalorder %s3821_s1, %s3979_s17 }
0x1101   : > { %p3108_p2 = scmp.lt.u32.totalorder %s3106_s8, %s3102_s10  ;;  %p3110_p11 = scmp.lt.u32.totalorder %s3102_s10, %s3821_s1 }
0x1102   : > { %p3104_p13 = pnand %p3103_p6, %p3980_p1 }
0x1103   : > { %p3109_p12 = por %p3108_p2, %p3107_p7 }
0x1104   : > { %p3105_p4 = pneg %p3104_p13 }
0x1105   : > { %p3111_p5 = por %p3110_p11, %p3109_p12 }
0x1107   : > { %p3112_p0 = pnand %p3111_p5, %p3105_p4 }
0x1109   : > { %3115 = shalt.err (!%p3112_p0)
}
0x110a   : > { %2619 = dma.vmem_to_hbm [thread:$0]  (%p3980_p1), %s3823_s29, 128, %s3821_s1, %s2070_s16  }
0x110b PF: > { %s3981_s7 = sld [smem:[#allocation27_spill]]  ;;  %s3982_s3 = sld [smem:[#allocation34_spill]] }
0x110c   : > { %s3983_s24 = sld [smem:[#allocation30_spill]] }
0x1111   : > { %s2096_s26 = sand.u32 1, %s3981_s7   ;;  %p3984_p3 = scmp.ne.s32.totalorder %s3982_s3, 0 }
0x1112   : > { %p3985_p10 = scmp.ge.s32.totalorder %s3983_s24, 2  ;;  %s2097_s27 = scalar_lea.sflag [#allocation7], %s2096_s26 }
0x1114   : > { %p2651_p9 = pnand %p3985_p10, %p3984_p3 }
0x1116   : > { %3161 = dma.done.wait (!%p2651_p9), %s2097_s27, 128  }
0x1117   : > { %3163 = vsyncadd (!%p2651_p9), %s2097_s27, 4294967168  ;;  %s39_s29 = sadd.s32 1, %s3983_s24   ;;  %s3986_s12 = sld [smem:[#allocation28_spill]] }
0x1118   : > { %p36_p8 = scmp.ge.s32.totalorder %s39_s29, 4   ;;  %s3987_s26 = sld [smem:[#allocation33_spill]] }
0x1119   : > { %s3988_s19 = sld [smem:[#allocation31_spill]]  ;;  %s3989_s24 = smov %s3170_s25 }
0x111a   : > { %s3991_s27 = smov %s3182_s28  ;;  %38 = sbr.rel (!%p36_p8) target bundleno = 25 (0x19), region = 185 }
0x111d   : > { %s3990_s25 = smov %s3986_s12 }
0x111f   : > { %s3992_s28 = smov %s3988_s19 }
0x1121   :  { %2102 = vsyncpa [#allocation6], 1 }
0x1122   :  { %2104 = vsyncpa [#allocation6 + $0x1], 1 }
0x1123   :  { %2105 = vsyncpa [#allocation9], 1 }
0x1124   :  { %2107 = vsyncpa [#allocation9 + $0x1], 1 }
0x1125   :  { %2108 = vsyncpa [#allocation12], 1 }
0x1126   :  { %2109 = vsyncpa [#allocation15], 1 }
0x1127   :  { %2110 = vsyncpa [#allocation18], 1 }
0x1128   :  { %2111 = vsyncpa [#allocation7], 1 }
0x1129   :  { %2113 = vsyncpa [#allocation7 + $0x1], 1 }

</bundles_post_ra>
